<compile_context>
chip_gen: v7x
topology: tpu7x:2x2x1
jax: 0.10.0
libtpu: 0.0.40
codegen_flags: <defaults>
</compile_context>

<pallas_src>
import jax
import jax.numpy as jnp
from jax.experimental import pallas as pl
from jax.experimental.pallas import tpu as pltpu


def _round_up(x, m):
    return ((x + m - 1) // m) * m


def _largest_divisor_tile(total, max_tile, multiple=8):
    """Largest d with d % multiple == 0, total % d == 0, d <= max_tile (soft)."""
    max_tile = int(min(max_tile, total))
    best = multiple
    d = multiple
    while d <= max_tile:
        if total % d == 0:
            best = d
        d += multiple
    return best


# ---------------------------------------------------------------------------
# Kernel 1: fused embedding (block-diag linear + ReLU) and input-gate matmul
#   GI = relu(x_cat @ W_bd + b_bd) @ W_ih + b_ih            (per row)
# Weights may be bf16 (f32 accumulation); GI is stored in the weight dtype.
# ---------------------------------------------------------------------------
def _embed_gi_kernel(x_ref, wbd_ref, bbd_ref, wih_ref, bih_ref, gi_ref):
    emb = jnp.maximum(
        jnp.dot(x_ref[...].astype(wbd_ref.dtype), wbd_ref[...],
                preferred_element_type=jnp.float32) + bbd_ref[...], 0.0)
    gi = (jnp.dot(emb.astype(wih_ref.dtype), wih_ref[...],
                  preferred_element_type=jnp.float32) + bih_ref[...])
    gi_ref[...] = gi.astype(gi_ref.dtype)


def fused_embed_gi(x_flat, params, tile_b):
    B, Din = x_flat.shape
    INp = params["embed_w"].shape[1]
    G3 = params["gi_w"].shape[1]
    gi_dtype = params["gi_w"].dtype
    gi_bytes = jnp.dtype(gi_dtype).itemsize
    w_bytes = jnp.dtype(params["embed_w"].dtype).itemsize

    # Explicit VMEM budget: double-buffered x/GI blocks + weights + temporaries.
    footprint = (2 * tile_b * (Din * 4 + G3 * gi_bytes)
                 + 2 * (Din * INp + INp * G3) * w_bytes
                 + 2 * (INp + G3) * 4
                 + tile_b * (INp + G3) * 4)
    vmem_limit = int(min(48 << 20, max(16 << 20, footprint + (4 << 20))))

    grid = (B // tile_b,)
    return pl.pallas_call(
        _embed_gi_kernel,
        out_shape=jax.ShapeDtypeStruct((B, G3), gi_dtype),
        grid_spec=pltpu.PrefetchScalarGridSpec(
            num_scalar_prefetch=0,
            grid=grid,
            in_specs=[
                pl.BlockSpec((tile_b, Din), lambda i: (i, 0)),   # rows of x_cat
                pl.BlockSpec((Din, INp), lambda i: (0, 0)),      # block-diag W
                pl.BlockSpec((1, INp), lambda i: (0, 0)),        # embed bias
                pl.BlockSpec((INp, G3), lambda i: (0, 0)),       # W_ih (padded)
                pl.BlockSpec((1, G3), lambda i: (0, 0)),         # folded b_ih
            ],
            out_specs=pl.BlockSpec((tile_b, G3), lambda i: (i, 0)),
        ),
        compiler_params=pltpu.CompilerParams(
            dimension_semantics=("parallel",),
            vmem_limit_bytes=vmem_limit),
    )(x_flat, params["embed_w"], params["embed_b"],
      params["gi_w"], params["gi_b"])


# ---------------------------------------------------------------------------
# Kernel 2: masked GRU recurrence.
# Grid = (N chunks [parallel], T chunks [arbitrary]).  h is kept in VMEM
# scratch and carried across the T-chunk axis; GI / mask / y slabs are
# BlockSpec-pipelined per T chunk so VMEM no longer scales with T.
# PyTorch GRU gate order [r, z, n];  h' = (1 - z) * n + z * h
# GI already contains b_ih (+ b_hh for the r/z gates); only b_hn remains.
# ---------------------------------------------------------------------------
def _gru_kernel(gi_ref, mask_ref, h0_ref, whh_ref, bhn_ref, y_ref, h_scr):
    tc = pl.program_id(1)
    t_chunk = gi_ref.shape[0]
    Hp = h_scr.shape[-1]

    @pl.when(tc == 0)
    def _():
        h_scr[...] = h0_ref[...]

    # Hoisted once per T-chunk (JAX does not CSE broadcast_in_dim in the loop).
    bhn_b = jnp.broadcast_to(bhn_ref[...], h_scr.shape)

    def step(t, carry):
        m = mask_ref[t]                                      # (n_tile, 1)
        hm = h_scr[...] * m                                  # hxs * masks[t]
        gh = jnp.dot(hm, whh_ref[...],
                     preferred_element_type=jnp.float32)     # (n_tile, 3*Hp)
        gi = gi_ref[t].astype(jnp.float32)                   # (n_tile, 3*Hp)
        # 128-aligned slices -> free views (each gate owns a lane slab)
        r = jax.nn.sigmoid(gi[:, 0:Hp] + gh[:, 0:Hp])
        z = jax.nn.sigmoid(gi[:, Hp:2 * Hp] + gh[:, Hp:2 * Hp])
        n = jnp.tanh(gi[:, 2 * Hp:3 * Hp]
                     + r * (gh[:, 2 * Hp:3 * Hp] + bhn_b))
        h_new = (1.0 - z) * n + z * hm
        h_scr[...] = h_new
        y_ref[t] = h_new
        return carry

    # Small unroll even for long chunks: lets the scheduler overlap the y store
    # / next GI load with the next step's matmul + EUP work.
    unroll = t_chunk if t_chunk <= 8 else 2
    jax.lax.fori_loop(0, t_chunk, step, 0, unroll=unroll)


def gru_sequence(gi, mask_rows, h0, params, n_tile, t_chunk):
    T, N_pad, G3 = gi.shape
    Hp = h0.shape[-1]
    gi_bytes = jnp.dtype(gi.dtype).itemsize

    # Double-buffered GI / mask / y slabs + (invariant) weights + h0 + scratch.
    footprint = (2 * t_chunk * n_tile * (G3 * gi_bytes + Hp * 4 + 4)
                 + 2 * (n_tile * Hp + Hp * G3 + Hp) * 4
                 + n_tile * Hp * 4)
    # Cap below v7x's 64 MiB physical VMEM; v5e/v6e have 128 MiB.
    vmem_limit = int(min(48 << 20, max(24 << 20, footprint + (4 << 20))))

    grid = (N_pad // n_tile, T // t_chunk)
    return pl.pallas_call(
        _gru_kernel,
        out_shape=jax.ShapeDtypeStruct((T, N_pad, Hp), jnp.float32),
        grid_spec=pltpu.PrefetchScalarGridSpec(
            num_scalar_prefetch=0,
            grid=grid,
            in_specs=[
                pl.BlockSpec((t_chunk, n_tile, G3), lambda j, tc: (tc, j, 0)),
                pl.BlockSpec((t_chunk, n_tile, 1), lambda j, tc: (tc, j, 0)),
                pl.BlockSpec((n_tile, Hp), lambda j, tc: (j, 0)),
                pl.BlockSpec((Hp, G3), lambda j, tc: (0, 0)),
                pl.BlockSpec((1, Hp), lambda j, tc: (0, 0)),
            ],
            out_specs=pl.BlockSpec((t_chunk, n_tile, Hp), lambda j, tc: (tc, j, 0)),
            scratch_shapes=[pltpu.VMEM((n_tile, Hp), jnp.float32)],
        ),
        compiler_params=pltpu.CompilerParams(
            dimension_semantics=("parallel", "arbitrary"),   # N chunks sharded on v7x
            vmem_limit_bytes=vmem_limit),
    )(gi, mask_rows, h0, params["gru_whh"], params["gru_bhn"])


# ---------------------------------------------------------------------------
# EndRNNLidar.forward
# ---------------------------------------------------------------------------
_GRU_VMEM_BUDGET = 20 << 20   # per-chunk resident budget used to pick t_chunk


def end_rnn_lidar_forward(params, robot_s, h_spatial_other, lidar_features, h,
                          masks, *, max_t_chunk=None):
    T, nenv, agent_num, _ = robot_s.shape
    N = nenv * agent_num
    H = h.shape[-1]
    Hp = params["gru_whh"].shape[0]
    G3 = params["gru_whh"].shape[1]
    gi_bytes = jnp.dtype(params["gi_w"].dtype).itemsize

    # ---- N tiling: up to 256 rows per chunk (v6e/v7x MXU is 256 wide); keep
    # >= 2 parallel chunks when possible so both v7x TensorCores get work. ----
    n_rows = _round_up(N, 8)
    n_tile = _largest_divisor_tile(n_rows, 256, 8)
    if n_tile == n_rows and n_rows >= 16:
        n_tile = _largest_divisor_tile(n_rows, n_rows // 2, 8)
    N_pad = n_rows                           # n_tile divides N_pad exactly

    # ---- T chunking: largest divisor of T whose double-buffered footprint
    # fits the budget (decouples VMEM from sequence length). ----
    def _fits(tcs):
        return (2 * tcs * n_tile * (G3 * gi_bytes + Hp * 4 + 4)
                + 2 * (n_tile * Hp + Hp * G3 + Hp) * 4
                + n_tile * Hp * 4) <= _GRU_VMEM_BUDGET

    cap = T if max_t_chunk is None else max(1, min(T, int(max_t_chunk)))
    t_chunk = 1
    for d in range(1, T + 1):
        if T % d == 0 and d <= cap and _fits(d):
            t_chunk = d

    # --- concat raw features once (cheap XLA op); pad rows for tiling ---
    x_cat = jnp.concatenate(
        [robot_s.reshape(T, N, -1),
         h_spatial_other.reshape(T, N, -1),
         lidar_features.reshape(T, N, -1)], axis=-1)          # (T, N, Din)
    if N_pad != N:
        x_cat = jnp.pad(x_cat, ((0, 0), (0, N_pad - N), (0, 0)))
    B = T * N_pad
    x_flat = x_cat.reshape(B, -1)
    Din = x_flat.shape[1]

    # ---- kernel-1 tile: exact divisor of B (no padded rows, no slice-copy),
    # pushed towards 2048 rows but bounded by a VMEM budget. ----
    row_bytes = 2 * (Din * 4 + G3 * gi_bytes)
    max_tile_b = max(8, (12 << 20) // max(row_bytes, 1))
    tile_b = _largest_divisor_tile(B, min(2048, max_tile_b), 8)

    gi = fused_embed_gi(x_flat, params, tile_b).reshape(T, N_pad, G3)

    # masks: per (t, env), broadcast over agents (matches RNNBase semantics)
    mask_rows = jnp.broadcast_to(masks.reshape(T, nenv, 1),
                                 (T, nenv, agent_num)).reshape(T, N, 1)
    if N_pad != N:
        mask_rows = jnp.pad(mask_rows, ((0, 0), (0, N_pad - N), (0, 0)))

    h0 = jnp.pad(h.reshape(N, H), ((0, N_pad - N), (0, Hp - H)))

    y = gru_sequence(gi, mask_rows, h0, params, n_tile, t_chunk)  # (T,N_pad,Hp)

    # TODO(synk): when the consumer tolerates it, emit y in bf16 and/or only the
    # first H lanes to cut writeback (H << Hp wastes >4x HBM at H=32).
    x_out = y[:, :N, :H].reshape(T, nenv, agent_num, H)
    h_new = x_out[T - 1].reshape(1, nenv, agent_num, H)       # == last hidden
    return x_out, h_new


# ---------------------------------------------------------------------------
# Parameters: raw (module layout) + packed/padded (kernel layout)
# ---------------------------------------------------------------------------
def init_raw_params(key, cfg):
    E = cfg["human_node_embedding_size"]
    H = cfg["human_node_rnn_size"]
    Dr = cfg["robot_embedding_size"]
    Dh = cfg["human_embedding_size"]
    Dl = cfg["obs_embedding_size"]
    IN = 2 * E
    ks = jax.random.split(key, 7)
    ortho = jax.nn.initializers.orthogonal()

    def lin(k, din, dout):
        kw, kb = jax.random.split(k)
        bound = 1.0 / (din ** 0.5)
        w = jax.random.uniform(kw, (din, dout), jnp.float32, -bound, bound)
        b = jax.random.uniform(kb, (dout,), jnp.float32, -bound, bound)
        return w, b

    rw, rb = lin(ks[0], Dr, E // 2)
    hw, hb = lin(ks[1], Dh, E // 2)
    lw, lb = lin(ks[2], Dl, E)
    wih = ortho(ks[3], (3 * H, IN), jnp.float32)     # PyTorch layout (3H, IN)
    whh = ortho(ks[4], (3 * H, H), jnp.float32)      # (3H, H)
    # RNNBase zero-inits GRU biases; use small non-zero values here so the
    # kernel's bias-folding path is exercised by the correctness check.
    bih = 0.1 * jax.random.normal(ks[5], (3 * H,), jnp.float32)
    bhh = 0.1 * jax.random.normal(ks[6], (3 * H,), jnp.float32)
    return dict(robot_w=rw, robot_b=rb, human_w=hw, human_b=hb,
                lidar_w=lw, lidar_b=lb,
                gru_wih=wih, gru_whh=whh, gru_bih=bih, gru_bhh=bhh)


def pack_params(raw, compute_dtype=jnp.bfloat16):
    """Pack/pad weights for the kernels.

    compute_dtype controls the kernel-1 weight dtype and the GI storage dtype
    (bf16 halves the dominant HBM traffic and triples MXU throughput on
    v6e/v7x; pass jnp.float32 for a bit-tighter numerics path).  The recurrent
    W_hh and all biases stay f32 for accuracy across the serial recurrence.
    """
    Dr, Eh = raw["robot_w"].shape            # Eh = E // 2
    Dh = raw["human_w"].shape[0]
    Dl, E = raw["lidar_w"].shape
    IN = 2 * E
    H = raw["gru_whh"].shape[1]
    Din = Dr + Dh + Dl
    INp = _round_up(IN, 128)
    Hp = _round_up(H, 128)

    # block-diagonal embed weight / bias (robot | human | lidar), lane-padded
    embed_w = jnp.zeros((Din, INp), jnp.float32)
    embed_w = embed_w.at[0:Dr, 0:Eh].set(raw["robot_w"])
    embed_w = embed_w.at[Dr:Dr + Dh, Eh:E].set(raw["human_w"])
    embed_w = embed_w.at[Dr + Dh:Din, E:IN].set(raw["lidar_w"])
    embed_b = jnp.zeros((1, INp), jnp.float32)
    embed_b = embed_b.at[0, 0:Eh].set(raw["robot_b"])
    embed_b = embed_b.at[0, Eh:E].set(raw["human_b"])
    embed_b = embed_b.at[0, E:IN].set(raw["lidar_b"])

    wih_t = raw["gru_wih"].T                 # (IN, 3H)
    whh_t = raw["gru_whh"].T                 # (H, 3H)
    bih = raw["gru_bih"]
    bhh = raw["gru_bhh"]

    # TODO(synk): if production H stays at 32 (3H = 96 <= 128), repack all
    # three gates into one 128-lane slab to cut the padded MXU/EUP work ~4x.
    gi_w = jnp.zeros((INp, 3 * Hp), jnp.float32)
    whh_p = jnp.zeros((Hp, 3 * Hp), jnp.float32)
    for g in range(3):                       # each gate gets its own Hp slab
        gi_w = gi_w.at[0:IN, g * Hp:g * Hp + H].set(wih_t[:, g * H:(g + 1) * H])
        whh_p = whh_p.at[0:H, g * Hp:g * Hp + H].set(whh_t[:, g * H:(g + 1) * H])

    # fold b_ih (all gates) + b_hh (r, z gates) into the precomputed GI bias
    gi_b = jnp.zeros((1, 3 * Hp), jnp.float32)
    gi_b = gi_b.at[0, 0 * Hp:0 * Hp + H].set(bih[0:H] + bhh[0:H])
    gi_b = gi_b.at[0, 1 * Hp:1 * Hp + H].set(bih[H:2 * H] + bhh[H:2 * H])
    gi_b = gi_b.at[0, 2 * Hp:2 * Hp + H].set(bih[2 * H:3 * H])
    bhn = jnp.zeros((1, Hp), jnp.float32).at[0, 0:H].set(bhh[2 * H:3 * H])

    return dict(embed_w=embed_w.astype(compute_dtype), embed_b=embed_b,
                gi_w=gi_w.astype(compute_dtype), gi_b=gi_b,
                gru_whh=whh_p, gru_bhn=bhn)


# ---------------------------------------------------------------------------
# Pure-JAX reference (raw module layout) for correctness check
# ---------------------------------------------------------------------------
def reference_forward(raw, robot_s, h_spatial_other, lidar_features, h, masks):
    T, nenv, agent_num, _ = robot_s.shape
    N = nenv * agent_num
    H = h.shape[-1]

    def emb(x, w, b):
        return jax.nn.relu(x @ w + b)

    x = jnp.concatenate([emb(robot_s, raw["robot_w"], raw["robot_b"]),
                         emb(h_spatial_other, raw["human_w"], raw["human_b"]),
                         emb(lidar_features, raw["lidar_w"], raw["lidar_b"])],
                        axis=-1).reshape(T, N, -1)
    mask_rows = jnp.broadcast_to(masks.reshape(T, nenv, 1),
                                 (T, nenv, agent_num)).reshape(T, N, 1)
    wih, whh = raw["gru_wih"], raw["gru_whh"]
    bih, bhh = raw["gru_bih"], raw["gru_bhh"]
    h_t = h.reshape(N, H)
    ys = []
    for t in range(T):
        hm = h_t * mask_rows[t]
        gi = x[t] @ wih.T + bih
        gh = hm @ whh.T + bhh
        r = jax.nn.sigmoid(gi[:, :H] + gh[:, :H])
        z = jax.nn.sigmoid(gi[:, H:2 * H] + gh[:, H:2 * H])
        n = jnp.tanh(gi[:, 2 * H:] + r * gh[:, 2 * H:])
        h_t = (1.0 - z) * n + z * hm
        ys.append(h_t)
    y = jnp.stack(ys).reshape(T, nenv, agent_num, H)
    return y, h_t.reshape(1, nenv, agent_num, H)


if __name__ == "__main__":
    cfg = dict(robot_embedding_size=8,
               human_embedding_size=8,
               obs_embedding_size=16,
               human_node_embedding_size=32,
               human_node_rnn_size=32)

    key = jax.random.PRNGKey(0)
    kp, kd1, kd2 = jax.random.split(key, 3)
    raw = init_raw_params(kp, cfg)
    params_f32 = pack_params(raw, jnp.float32)
    params_bf16 = pack_params(raw, jnp.bfloat16)     # production default

    def make_inputs(k, T, nenv, agent_num):
        kr, kh, kl, khid, km = jax.random.split(k, 5)
        robot_s = jax.random.normal(
            kr, (T, nenv, agent_num, cfg["robot_embedding_size"]), jnp.float32)
        h_spatial = jax.random.normal(
            kh, (T, nenv, agent_num, cfg["human_embedding_size"]), jnp.float32)
        lidar = jax.random.normal(
            kl, (T, nenv, agent_num, cfg["obs_embedding_size"]), jnp.float32)
        h = jax.random.normal(
            khid, (1, nenv, agent_num, cfg["human_node_rnn_size"]), jnp.float32)
        masks = (jax.random.uniform(km, (T, nenv)) > 0.3).astype(jnp.float32)
        return robot_s, h_spatial, lidar, h, masks

    fwd = jax.jit(end_rnn_lidar_forward, static_argnames=("max_t_chunk",))

    # --- test 1: f32 packing, tight tolerance (validates kernel structure) ---
    T, nenv, agent_num = 4, 2, 2
    inputs1 = make_inputs(kd1, T, nenv, agent_num)
    x_ref, h_ref = reference_forward(raw, *inputs1)
    x_out, h_new = fwd(params_f32, *inputs1)
    jax.block_until_ready((x_out, h_new))
    assert x_out.shape == (T, nenv, agent_num, cfg["human_node_rnn_size"])
    assert h_new.shape == (1, nenv, agent_num, cfg["human_node_rnn_size"])
    assert jnp.allclose(x_out, x_ref, rtol=1e-4, atol=1e-4)
    assert jnp.allclose(h_new, h_ref, rtol=1e-4, atol=1e-4)

    # --- test 2: bf16 GI / weights (halved HBM traffic), relaxed tolerance ---
    x_out, h_new = fwd(params_bf16, *inputs1)
    jax.block_until_ready((x_out, h_new))
    assert jnp.allclose(x_out, x_ref, rtol=5e-2, atol=5e-2)
    assert jnp.allclose(h_new, h_ref, rtol=5e-2, atol=5e-2)

    # --- test 3: exercise N padding, multi-chunk parallel grid and forced
    #             T-chunking (hidden-state carry across the arbitrary axis) ---
    T, nenv, agent_num = 6, 3, 5
    inputs2 = make_inputs(kd2, T, nenv, agent_num)
    x_ref2, h_ref2 = reference_forward(raw, *inputs2)
    x_out2, h_new2 = fwd(params_bf16, *inputs2, max_t_chunk=2)
    jax.block_until_ready((x_out2, h_new2))
    assert x_out2.shape == (T, nenv, agent_num, cfg["human_node_rnn_size"])
    assert jnp.allclose(x_out2, x_ref2, rtol=5e-2, atol=5e-2)
    assert jnp.allclose(h_new2, h_ref2, rtol=5e-2, atol=5e-2)

    print("KERNEL_OK")
</pallas_src>

<mosaic_0001>
module attributes {stable_mosaic.version = 11 : i64} {
  func.func @_embed_gi_kernel(%arg0: i32, %arg1: memref<32x32xf32, #tpu.memory_space<vmem>>, %arg2: memref<32x128xf32, #tpu.memory_space<vmem>>, %arg3: memref<1x128xf32, #tpu.memory_space<vmem>>, %arg4: memref<128x384xf32, #tpu.memory_space<vmem>>, %arg5: memref<1x384xf32, #tpu.memory_space<vmem>>, %arg6: memref<32x384xf32, #tpu.memory_space<vmem>>) attributes {dimension_semantics = [#tpu.dimension_semantics<parallel>], iteration_bounds = array<i64: 1>, scalar_prefetch = 0 : i64, scratch_operands = 0 : i64, tpu.core_type = #tpu.core_type<tc>, window_params = [{transform_indices = @transform_0, window_bounds = array<i64: 32, 32>}, {pipeline_mode = #tpu.pipeline_mode<synchronous>, transform_indices = @transform_1, window_bounds = array<i64: 32, 128>}, {pipeline_mode = #tpu.pipeline_mode<synchronous>, transform_indices = @transform_2, window_bounds = array<i64: 1, 128>}, {pipeline_mode = #tpu.pipeline_mode<synchronous>, transform_indices = @transform_3, window_bounds = array<i64: 128, 384>}, {pipeline_mode = #tpu.pipeline_mode<synchronous>, transform_indices = @transform_4, window_bounds = array<i64: 1, 384>}, {transform_indices = @transform_5, window_bounds = array<i64: 32, 384>}]} {
    %c0 = arith.constant 0 : index
    %c0_0 = arith.constant 0 : index
    %0 = vector.load %arg1[%c0, %c0_0] : memref<32x32xf32, #tpu.memory_space<vmem>>, vector<32x32xf32>
    %c0_1 = arith.constant 0 : index
    %c0_2 = arith.constant 0 : index
    %1 = vector.load %arg2[%c0_1, %c0_2] : memref<32x128xf32, #tpu.memory_space<vmem>>, vector<32x128xf32>
    %cst = arith.constant dense<0.000000e+00> : vector<32x128xf32>
    %2 = tpu.matmul %0, %1, %cst {dimension_numbers = #tpu.dot_dimension_numbers<[1], [0], [0], [1], [0, 0, 1, 1], [], []>} : vector<32x32xf32>, vector<32x128xf32>, vector<32x128xf32> -> vector<32x128xf32>
    %c0_3 = arith.constant 0 : index
    %c0_4 = arith.constant 0 : index
    %3 = vector.load %arg3[%c0_3, %c0_4] : memref<1x128xf32, #tpu.memory_space<vmem>>, vector<1x128xf32>
    %4 = vector.broadcast %3 : vector<1x128xf32> to vector<32x128xf32>
    %5 = arith.addf %2, %4 : vector<32x128xf32>
    %cst_5 = arith.constant 0.000000e+00 : f32
    %6 = vector.broadcast %cst_5 : f32 to vector<32x128xf32>
    %7 = arith.maximumf %5, %6 : vector<32x128xf32>
    %c0_6 = arith.constant 0 : index
    %c0_7 = arith.constant 0 : index
    %8 = vector.load %arg4[%c0_6, %c0_7] : memref<128x384xf32, #tpu.memory_space<vmem>>, vector<128x384xf32>
    %cst_8 = arith.constant dense<0.000000e+00> : vector<32x384xf32>
    %9 = tpu.matmul %7, %8, %cst_8 {dimension_numbers = #tpu.dot_dimension_numbers<[1], [0], [0], [1], [0, 0, 1, 1], [], []>} : vector<32x128xf32>, vector<128x384xf32>, vector<32x384xf32> -> vector<32x384xf32>
    %c0_9 = arith.constant 0 : index
    %c0_10 = arith.constant 0 : index
    %10 = vector.load %arg5[%c0_9, %c0_10] : memref<1x384xf32, #tpu.memory_space<vmem>>, vector<1x384xf32>
    %11 = vector.broadcast %10 : vector<1x384xf32> to vector<32x384xf32>
    %12 = arith.addf %9, %11 : vector<32x384xf32>
    %c0_11 = arith.constant 0 : index
    %c0_12 = arith.constant 0 : index
    %13 = vector.load %arg6[%c0_11, %c0_12] : memref<32x384xf32, #tpu.memory_space<vmem>>, vector<32x384xf32>
    tpu.vector_store %arg6[%c0_11, %c0_12], %12 {strides = array<i32>} : memref<32x384xf32, #tpu.memory_space<vmem>>, vector<32x384xf32>,
    return
  }
  func.func @transform_0(%arg0: i32) -> (i32, i32) {
    %c0_i32 = arith.constant 0 : i32
    %c0_i32_0 = arith.constant 0 : i32
    return %arg0, %c0_i32 : i32, i32
  }
  func.func @transform_1(%arg0: i32) -> (i32, i32) {
    %c0_i32 = arith.constant 0 : i32
    %c0_i32_0 = arith.constant 0 : i32
    %c0_i32_1 = arith.constant 0 : i32
    return %c0_i32, %c0_i32_0 : i32, i32
  }
  func.func @transform_2(%arg0: i32) -> (i32, i32) {
    %c0_i32 = arith.constant 0 : i32
    %c0_i32_0 = arith.constant 0 : i32
    %c0_i32_1 = arith.constant 0 : i32
    return %c0_i32, %c0_i32_0 : i32, i32
  }
  func.func @transform_3(%arg0: i32) -> (i32, i32) {
    %c0_i32 = arith.constant 0 : i32
    %c0_i32_0 = arith.constant 0 : i32
    %c0_i32_1 = arith.constant 0 : i32
    return %c0_i32, %c0_i32_0 : i32, i32
  }
  func.func @transform_4(%arg0: i32) -> (i32, i32) {
    %c0_i32 = arith.constant 0 : i32
    %c0_i32_0 = arith.constant 0 : i32
    %c0_i32_1 = arith.constant 0 : i32
    return %c0_i32, %c0_i32_0 : i32, i32
  }
  func.func @transform_5(%arg0: i32) -> (i32, i32) {
    %c0_i32 = arith.constant 0 : i32
    %c0_i32_0 = arith.constant 0 : i32
    return %arg0, %c0_i32 : i32, i32
  }
}

module attributes {stable_mosaic.version = 11 : i64} {
  func.func @_gru_kernel(%arg0: i32, %arg1: i32, %arg2: memref<4x8x384xf32, #tpu.memory_space<vmem>>, %arg3: memref<4x8x1xf32, #tpu.memory_space<vmem>>, %arg4: memref<8x128xf32, #tpu.memory_space<vmem>>, %arg5: memref<128x384xf32, #tpu.memory_space<vmem>>, %arg6: memref<1x128xf32, #tpu.memory_space<vmem>>, %arg7: memref<4x8x128xf32, #tpu.memory_space<vmem>>, %arg8: memref<8x128xf32, #tpu.memory_space<vmem>>) attributes {dimension_semantics = [#tpu.dimension_semantics<parallel>, #tpu.dimension_semantics<arbitrary>], iteration_bounds = array<i64: 1, 1>, scalar_prefetch = 0 : i64, scratch_operands = 1 : i64, tpu.core_type = #tpu.core_type<tc>, window_params = [{transform_indices = @transform_0, window_bounds = array<i64: 4, 8, 384>}, {transform_indices = @transform_1, window_bounds = array<i64: 4, 8, 1>}, {transform_indices = @transform_2, window_bounds = array<i64: 8, 128>}, {pipeline_mode = #tpu.pipeline_mode<synchronous>, transform_indices = @transform_3, window_bounds = array<i64: 128, 384>}, {pipeline_mode = #tpu.pipeline_mode<synchronous>, transform_indices = @transform_4, window_bounds = array<i64: 1, 128>}, {transform_indices = @transform_5, window_bounds = array<i64: 4, 8, 128>}]} {
    %c0_i32 = arith.constant 0 : i32
    %0 = arith.cmpi eq, %arg1, %c0_i32 : i32
    %1 = arith.extui %0 : i1 to i32
    %c0_i32_0 = arith.constant 0 : i32
    %2 = arith.cmpi ne, %1, %c0_i32_0 : i32
    scf.if %2 {
      %c0_66 = arith.constant 0 : index
      %c0_67 = arith.constant 0 : index
      %178 = vector.load %arg4[%c0_66, %c0_67] : memref<8x128xf32, #tpu.memory_space<vmem>>, vector<8x128xf32>
      %c0_68 = arith.constant 0 : index
      %c0_69 = arith.constant 0 : index
      %179 = vector.load %arg8[%c0_68, %c0_69] : memref<8x128xf32, #tpu.memory_space<vmem>>, vector<8x128xf32>
      tpu.vector_store %arg8[%c0_68, %c0_69], %178 {strides = array<i32>} : memref<8x128xf32, #tpu.memory_space<vmem>>, vector<8x128xf32>,
    } else {
    }
    %c0 = arith.constant 0 : index
    %c0_1 = arith.constant 0 : index
    %3 = vector.load %arg6[%c0, %c0_1] : memref<1x128xf32, #tpu.memory_space<vmem>>, vector<1x128xf32>
    %4 = vector.shape_cast %3 : vector<1x128xf32> to vector<1x128xf32>
    %5 = vector.broadcast %4 : vector<1x128xf32> to vector<8x128xf32>
    %c0_i32_2 = arith.constant 0 : i32
    %6 = arith.index_cast %c0_i32_2 : i32 to index
    %c0_3 = arith.constant 0 : index
    %c0_4 = arith.constant 0 : index
    %7 = vector.load %arg3[%6, %c0_3, %c0_4] : memref<4x8x1xf32, #tpu.memory_space<vmem>>, vector<1x8x1xf32>
    %8 = vector.shape_cast %7 : vector<1x8x1xf32> to vector<8x1xf32>
    %c0_5 = arith.constant 0 : index
    %c0_6 = arith.constant 0 : index
    %9 = vector.load %arg8[%c0_5, %c0_6] : memref<8x128xf32, #tpu.memory_space<vmem>>, vector<8x128xf32>
    %10 = vector.broadcast %8 : vector<8x1xf32> to vector<8x128xf32>
    %11 = arith.mulf %9, %10 : vector<8x128xf32>
    %c0_7 = arith.constant 0 : index
    %c0_8 = arith.constant 0 : index
    %12 = vector.load %arg5[%c0_7, %c0_8] : memref<128x384xf32, #tpu.memory_space<vmem>>, vector<128x384xf32>
    %cst = arith.constant dense<0.000000e+00> : vector<8x384xf32>
    %13 = tpu.matmul %11, %12, %cst {dimension_numbers = #tpu.dot_dimension_numbers<[1], [0], [0], [1], [0, 0, 1, 1], [], []>} : vector<8x128xf32>, vector<128x384xf32>, vector<8x384xf32> -> vector<8x384xf32>
    %14 = arith.index_cast %c0_i32_2 : i32 to index
    %c0_9 = arith.constant 0 : index
    %c0_10 = arith.constant 0 : index
    %15 = vector.load %arg2[%14, %c0_9, %c0_10] : memref<4x8x384xf32, #tpu.memory_space<vmem>>, vector<1x8x384xf32>
    %16 = vector.shape_cast %15 : vector<1x8x384xf32> to vector<8x384xf32>
    %17 = vector.extract_strided_slice %16 {offsets = [0, 0], sizes = [8, 128], strides = [1, 1]} : vector<8x384xf32> to vector<8x128xf32>
    %18 = vector.extract_strided_slice %13 {offsets = [0, 0], sizes = [8, 128], strides = [1, 1]} : vector<8x384xf32> to vector<8x128xf32>
    %19 = arith.addf %17, %18 : vector<8x128xf32>
    %20 = arith.negf %19 : vector<8x128xf32>
    %21 = math.exp %20 : vector<8x128xf32>
    %cst_11 = arith.constant 1.000000e+00 : f32
    %22 = vector.broadcast %cst_11 : f32 to vector<8x128xf32>
    %23 = arith.addf %22, %21 : vector<8x128xf32>
    %24 = arith.divf %22, %23 : vector<8x128xf32>
    %25 = vector.extract_strided_slice %16 {offsets = [0, 128], sizes = [8, 128], strides = [1, 1]} : vector<8x384xf32> to vector<8x128xf32>
    %26 = vector.extract_strided_slice %13 {offsets = [0, 128], sizes = [8, 128], strides = [1, 1]} : vector<8x384xf32> to vector<8x128xf32>
    %27 = arith.addf %25, %26 : vector<8x128xf32>
    %28 = arith.negf %27 : vector<8x128xf32>
    %29 = math.exp %28 : vector<8x128xf32>
    %cst_12 = arith.constant 1.000000e+00 : f32
    %30 = vector.broadcast %cst_12 : f32 to vector<8x128xf32>
    %31 = arith.addf %30, %29 : vector<8x128xf32>
    %32 = arith.divf %30, %31 : vector<8x128xf32>
    %33 = vector.extract_strided_slice %16 {offsets = [0, 256], sizes = [8, 128], strides = [1, 1]} : vector<8x384xf32> to vector<8x128xf32>
    %34 = vector.extract_strided_slice %13 {offsets = [0, 256], sizes = [8, 128], strides = [1, 1]} : vector<8x384xf32> to vector<8x128xf32>
    %35 = arith.addf %34, %5 : vector<8x128xf32>
    %36 = arith.mulf %24, %35 : vector<8x128xf32>
    %37 = arith.addf %33, %36 : vector<8x128xf32>
    %38 = math.tanh %37 : vector<8x128xf32>
    %cst_13 = arith.constant 1.000000e+00 : f32
    %39 = vector.broadcast %cst_13 : f32 to vector<8x128xf32>
    %40 = arith.subf %39, %32 : vector<8x128xf32>
    %41 = arith.mulf %40, %38 : vector<8x128xf32>
    %42 = arith.mulf %32, %11 : vector<8x128xf32>
    %43 = arith.addf %41, %42 : vector<8x128xf32>
    %c0_14 = arith.constant 0 : index
    %c0_15 = arith.constant 0 : index
    %44 = vector.load %arg8[%c0_14, %c0_15] : memref<8x128xf32, #tpu.memory_space<vmem>>, vector<8x128xf32>
    tpu.vector_store %arg8[%c0_14, %c0_15], %43 {strides = array<i32>} : memref<8x128xf32, #tpu.memory_space<vmem>>, vector<8x128xf32>,
    %45 = arith.index_cast %c0_i32_2 : i32 to index
    %c0_16 = arith.constant 0 : index
    %c0_17 = arith.constant 0 : index
    %46 = vector.load %arg7[%45, %c0_16, %c0_17] : memref<4x8x128xf32, #tpu.memory_space<vmem>>, vector<1x8x128xf32>
    %47 = vector.shape_cast %46 : vector<1x8x128xf32> to vector<8x128xf32>
    %48 = vector.shape_cast %43 : vector<8x128xf32> to vector<1x8x128xf32>
    tpu.vector_store %arg7[%45, %c0_16, %c0_17], %48 {strides = array<i32>} : memref<4x8x128xf32, #tpu.memory_space<vmem>>, vector<1x8x128xf32>,
    %c1_i32 = arith.constant 1 : i32
    %49 = arith.index_cast %c1_i32 : i32 to index
    %c0_18 = arith.constant 0 : index
    %c0_19 = arith.constant 0 : index
    %50 = vector.load %arg3[%49, %c0_18, %c0_19] : memref<4x8x1xf32, #tpu.memory_space<vmem>>, vector<1x8x1xf32>
    %51 = vector.shape_cast %50 : vector<1x8x1xf32> to vector<8x1xf32>
    %c0_20 = arith.constant 0 : index
    %c0_21 = arith.constant 0 : index
    %52 = vector.load %arg8[%c0_20, %c0_21] : memref<8x128xf32, #tpu.memory_space<vmem>>, vector<8x128xf32>
    %53 = vector.broadcast %51 : vector<8x1xf32> to vector<8x128xf32>
    %54 = arith.mulf %52, %53 : vector<8x128xf32>
    %c0_22 = arith.constant 0 : index
    %c0_23 = arith.constant 0 : index
    %55 = vector.load %arg5[%c0_22, %c0_23] : memref<128x384xf32, #tpu.memory_space<vmem>>, vector<128x384xf32>
    %cst_24 = arith.constant dense<0.000000e+00> : vector<8x384xf32>
    %56 = tpu.matmul %54, %55, %cst_24 {dimension_numbers = #tpu.dot_dimension_numbers<[1], [0], [0], [1], [0, 0, 1, 1], [], []>} : vector<8x128xf32>, vector<128x384xf32>, vector<8x384xf32> -> vector<8x384xf32>
    %57 = arith.index_cast %c1_i32 : i32 to index
    %c0_25 = arith.constant 0 : index
    %c0_26 = arith.constant 0 : index
    %58 = vector.load %arg2[%57, %c0_25, %c0_26] : memref<4x8x384xf32, #tpu.memory_space<vmem>>, vector<1x8x384xf32>
    %59 = vector.shape_cast %58 : vector<1x8x384xf32> to vector<8x384xf32>
    %60 = vector.extract_strided_slice %59 {offsets = [0, 0], sizes = [8, 128], strides = [1, 1]} : vector<8x384xf32> to vector<8x128xf32>
    %61 = vector.extract_strided_slice %56 {offsets = [0, 0], sizes = [8, 128], strides = [1, 1]} : vector<8x384xf32> to vector<8x128xf32>
    %62 = arith.addf %60, %61 : vector<8x128xf32>
    %63 = arith.negf %62 : vector<8x128xf32>
    %64 = math.exp %63 : vector<8x128xf32>
    %cst_27 = arith.constant 1.000000e+00 : f32
    %65 = vector.broadcast %cst_27 : f32 to vector<8x128xf32>
    %66 = arith.addf %65, %64 : vector<8x128xf32>
    %67 = arith.divf %65, %66 : vector<8x128xf32>
    %68 = vector.extract_strided_slice %59 {offsets = [0, 128], sizes = [8, 128], strides = [1, 1]} : vector<8x384xf32> to vector<8x128xf32>
    %69 = vector.extract_strided_slice %56 {offsets = [0, 128], sizes = [8, 128], strides = [1, 1]} : vector<8x384xf32> to vector<8x128xf32>
    %70 = arith.addf %68, %69 : vector<8x128xf32>
    %71 = arith.negf %70 : vector<8x128xf32>
    %72 = math.exp %71 : vector<8x128xf32>
    %cst_28 = arith.constant 1.000000e+00 : f32
    %73 = vector.broadcast %cst_28 : f32 to vector<8x128xf32>
    %74 = arith.addf %73, %72 : vector<8x128xf32>
    %75 = arith.divf %73, %74 : vector<8x128xf32>
    %76 = vector.extract_strided_slice %59 {offsets = [0, 256], sizes = [8, 128], strides = [1, 1]} : vector<8x384xf32> to vector<8x128xf32>
    %77 = vector.extract_strided_slice %56 {offsets = [0, 256], sizes = [8, 128], strides = [1, 1]} : vector<8x384xf32> to vector<8x128xf32>
    %78 = arith.addf %77, %5 : vector<8x128xf32>
    %79 = arith.mulf %67, %78 : vector<8x128xf32>
    %80 = arith.addf %76, %79 : vector<8x128xf32>
    %81 = math.tanh %80 : vector<8x128xf32>
    %cst_29 = arith.constant 1.000000e+00 : f32
    %82 = vector.broadcast %cst_29 : f32 to vector<8x128xf32>
    %83 = arith.subf %82, %75 : vector<8x128xf32>
    %84 = arith.mulf %83, %81 : vector<8x128xf32>
    %85 = arith.mulf %75, %54 : vector<8x128xf32>
    %86 = arith.addf %84, %85 : vector<8x128xf32>
    %c0_30 = arith.constant 0 : index
    %c0_31 = arith.constant 0 : index
    %87 = vector.load %arg8[%c0_30, %c0_31] : memref<8x128xf32, #tpu.memory_space<vmem>>, vector<8x128xf32>
    tpu.vector_store %arg8[%c0_30, %c0_31], %86 {strides = array<i32>} : memref<8x128xf32, #tpu.memory_space<vmem>>, vector<8x128xf32>,
    %88 = arith.index_cast %c1_i32 : i32 to index
    %c0_32 = arith.constant 0 : index
    %c0_33 = arith.constant 0 : index
    %89 = vector.load %arg7[%88, %c0_32, %c0_33] : memref<4x8x128xf32, #tpu.memory_space<vmem>>, vector<1x8x128xf32>
    %90 = vector.shape_cast %89 : vector<1x8x128xf32> to vector<8x128xf32>
    %91 = vector.shape_cast %86 : vector<8x128xf32> to vector<1x8x128xf32>
    tpu.vector_store %arg7[%88, %c0_32, %c0_33], %91 {strides = array<i32>} : memref<4x8x128xf32, #tpu.memory_space<vmem>>, vector<1x8x128xf32>,
    %c2_i32 = arith.constant 2 : i32
    %92 = arith.index_cast %c2_i32 : i32 to index
    %c0_34 = arith.constant 0 : index
    %c0_35 = arith.constant 0 : index
    %93 = vector.load %arg3[%92, %c0_34, %c0_35] : memref<4x8x1xf32, #tpu.memory_space<vmem>>, vector<1x8x1xf32>
    %94 = vector.shape_cast %93 : vector<1x8x1xf32> to vector<8x1xf32>
    %c0_36 = arith.constant 0 : index
    %c0_37 = arith.constant 0 : index
    %95 = vector.load %arg8[%c0_36, %c0_37] : memref<8x128xf32, #tpu.memory_space<vmem>>, vector<8x128xf32>
    %96 = vector.broadcast %94 : vector<8x1xf32> to vector<8x128xf32>
    %97 = arith.mulf %95, %96 : vector<8x128xf32>
    %c0_38 = arith.constant 0 : index
    %c0_39 = arith.constant 0 : index
    %98 = vector.load %arg5[%c0_38, %c0_39] : memref<128x384xf32, #tpu.memory_space<vmem>>, vector<128x384xf32>
    %cst_40 = arith.constant dense<0.000000e+00> : vector<8x384xf32>
    %99 = tpu.matmul %97, %98, %cst_40 {dimension_numbers = #tpu.dot_dimension_numbers<[1], [0], [0], [1], [0, 0, 1, 1], [], []>} : vector<8x128xf32>, vector<128x384xf32>, vector<8x384xf32> -> vector<8x384xf32>
    %100 = arith.index_cast %c2_i32 : i32 to index
    %c0_41 = arith.constant 0 : index
    %c0_42 = arith.constant 0 : index
    %101 = vector.load %arg2[%100, %c0_41, %c0_42] : memref<4x8x384xf32, #tpu.memory_space<vmem>>, vector<1x8x384xf32>
    %102 = vector.shape_cast %101 : vector<1x8x384xf32> to vector<8x384xf32>
    %103 = vector.extract_strided_slice %102 {offsets = [0, 0], sizes = [8, 128], strides = [1, 1]} : vector<8x384xf32> to vector<8x128xf32>
    %104 = vector.extract_strided_slice %99 {offsets = [0, 0], sizes = [8, 128], strides = [1, 1]} : vector<8x384xf32> to vector<8x128xf32>
    %105 = arith.addf %103, %104 : vector<8x128xf32>
    %106 = arith.negf %105 : vector<8x128xf32>
    %107 = math.exp %106 : vector<8x128xf32>
    %cst_43 = arith.constant 1.000000e+00 : f32
    %108 = vector.broadcast %cst_43 : f32 to vector<8x128xf32>
    %109 = arith.addf %108, %107 : vector<8x128xf32>
    %110 = arith.divf %108, %109 : vector<8x128xf32>
    %111 = vector.extract_strided_slice %102 {offsets = [0, 128], sizes = [8, 128], strides = [1, 1]} : vector<8x384xf32> to vector<8x128xf32>
    %112 = vector.extract_strided_slice %99 {offsets = [0, 128], sizes = [8, 128], strides = [1, 1]} : vector<8x384xf32> to vector<8x128xf32>
    %113 = arith.addf %111, %112 : vector<8x128xf32>
    %114 = arith.negf %113 : vector<8x128xf32>
    %115 = math.exp %114 : vector<8x128xf32>
    %cst_44 = arith.constant 1.000000e+00 : f32
    %116 = vector.broadcast %cst_44 : f32 to vector<8x128xf32>
    %117 = arith.addf %116, %115 : vector<8x128xf32>
    %118 = arith.divf %116, %117 : vector<8x128xf32>
    %119 = vector.extract_strided_slice %102 {offsets = [0, 256], sizes = [8, 128], strides = [1, 1]} : vector<8x384xf32> to vector<8x128xf32>
    %120 = vector.extract_strided_slice %99 {offsets = [0, 256], sizes = [8, 128], strides = [1, 1]} : vector<8x384xf32> to vector<8x128xf32>
    %121 = arith.addf %120, %5 : vector<8x128xf32>
    %122 = arith.mulf %110, %121 : vector<8x128xf32>
    %123 = arith.addf %119, %122 : vector<8x128xf32>
    %124 = math.tanh %123 : vector<8x128xf32>
    %cst_45 = arith.constant 1.000000e+00 : f32
    %125 = vector.broadcast %cst_45 : f32 to vector<8x128xf32>
    %126 = arith.subf %125, %118 : vector<8x128xf32>
    %127 = arith.mulf %126, %124 : vector<8x128xf32>
    %128 = arith.mulf %118, %97 : vector<8x128xf32>
    %129 = arith.addf %127, %128 : vector<8x128xf32>
    %c0_46 = arith.constant 0 : index
    %c0_47 = arith.constant 0 : index
    %130 = vector.load %arg8[%c0_46, %c0_47] : memref<8x128xf32, #tpu.memory_space<vmem>>, vector<8x128xf32>
    tpu.vector_store %arg8[%c0_46, %c0_47], %129 {strides = array<i32>} : memref<8x128xf32, #tpu.memory_space<vmem>>, vector<8x128xf32>,
    %131 = arith.index_cast %c2_i32 : i32 to index
    %c0_48 = arith.constant 0 : index
    %c0_49 = arith.constant 0 : index
    %132 = vector.load %arg7[%131, %c0_48, %c0_49] : memref<4x8x128xf32, #tpu.memory_space<vmem>>, vector<1x8x128xf32>
    %133 = vector.shape_cast %132 : vector<1x8x128xf32> to vector<8x128xf32>
    %134 = vector.shape_cast %129 : vector<8x128xf32> to vector<1x8x128xf32>
    tpu.vector_store %arg7[%131, %c0_48, %c0_49], %134 {strides = array<i32>} : memref<4x8x128xf32, #tpu.memory_space<vmem>>, vector<1x8x128xf32>,
    %c3_i32 = arith.constant 3 : i32
    %135 = arith.index_cast %c3_i32 : i32 to index
    %c0_50 = arith.constant 0 : index
    %c0_51 = arith.constant 0 : index
    %136 = vector.load %arg3[%135, %c0_50, %c0_51] : memref<4x8x1xf32, #tpu.memory_space<vmem>>, vector<1x8x1xf32>
    %137 = vector.shape_cast %136 : vector<1x8x1xf32> to vector<8x1xf32>
    %c0_52 = arith.constant 0 : index
    %c0_53 = arith.constant 0 : index
    %138 = vector.load %arg8[%c0_52, %c0_53] : memref<8x128xf32, #tpu.memory_space<vmem>>, vector<8x128xf32>
    %139 = vector.broadcast %137 : vector<8x1xf32> to vector<8x128xf32>
    %140 = arith.mulf %138, %139 : vector<8x128xf32>
    %c0_54 = arith.constant 0 : index
    %c0_55 = arith.constant 0 : index
    %141 = vector.load %arg5[%c0_54, %c0_55] : memref<128x384xf32, #tpu.memory_space<vmem>>, vector<128x384xf32>
    %cst_56 = arith.constant dense<0.000000e+00> : vector<8x384xf32>
    %142 = tpu.matmul %140, %141, %cst_56 {dimension_numbers = #tpu.dot_dimension_numbers<[1], [0], [0], [1], [0, 0, 1, 1], [], []>} : vector<8x128xf32>, vector<128x384xf32>, vector<8x384xf32> -> vector<8x384xf32>
    %143 = arith.index_cast %c3_i32 : i32 to index
    %c0_57 = arith.constant 0 : index
    %c0_58 = arith.constant 0 : index
    %144 = vector.load %arg2[%143, %c0_57, %c0_58] : memref<4x8x384xf32, #tpu.memory_space<vmem>>, vector<1x8x384xf32>
    %145 = vector.shape_cast %144 : vector<1x8x384xf32> to vector<8x384xf32>
    %146 = vector.extract_strided_slice %145 {offsets = [0, 0], sizes = [8, 128], strides = [1, 1]} : vector<8x384xf32> to vector<8x128xf32>
    %147 = vector.extract_strided_slice %142 {offsets = [0, 0], sizes = [8, 128], strides = [1, 1]} : vector<8x384xf32> to vector<8x128xf32>
    %148 = arith.addf %146, %147 : vector<8x128xf32>
    %149 = arith.negf %148 : vector<8x128xf32>
    %150 = math.exp %149 : vector<8x128xf32>
    %cst_59 = arith.constant 1.000000e+00 : f32
    %151 = vector.broadcast %cst_59 : f32 to vector<8x128xf32>
    %152 = arith.addf %151, %150 : vector<8x128xf32>
    %153 = arith.divf %151, %152 : vector<8x128xf32>
    %154 = vector.extract_strided_slice %145 {offsets = [0, 128], sizes = [8, 128], strides = [1, 1]} : vector<8x384xf32> to vector<8x128xf32>
    %155 = vector.extract_strided_slice %142 {offsets = [0, 128], sizes = [8, 128], strides = [1, 1]} : vector<8x384xf32> to vector<8x128xf32>
    %156 = arith.addf %154, %155 : vector<8x128xf32>
    %157 = arith.negf %156 : vector<8x128xf32>
    %158 = math.exp %157 : vector<8x128xf32>
    %cst_60 = arith.constant 1.000000e+00 : f32
    %159 = vector.broadcast %cst_60 : f32 to vector<8x128xf32>
    %160 = arith.addf %159, %158 : vector<8x128xf32>
    %161 = arith.divf %159, %160 : vector<8x128xf32>
    %162 = vector.extract_strided_slice %145 {offsets = [0, 256], sizes = [8, 128], strides = [1, 1]} : vector<8x384xf32> to vector<8x128xf32>
    %163 = vector.extract_strided_slice %142 {offsets = [0, 256], sizes = [8, 128], strides = [1, 1]} : vector<8x384xf32> to vector<8x128xf32>
    %164 = arith.addf %163, %5 : vector<8x128xf32>
    %165 = arith.mulf %153, %164 : vector<8x128xf32>
    %166 = arith.addf %162, %165 : vector<8x128xf32>
    %167 = math.tanh %166 : vector<8x128xf32>
    %cst_61 = arith.constant 1.000000e+00 : f32
    %168 = vector.broadcast %cst_61 : f32 to vector<8x128xf32>
    %169 = arith.subf %168, %161 : vector<8x128xf32>
    %170 = arith.mulf %169, %167 : vector<8x128xf32>
    %171 = arith.mulf %161, %140 : vector<8x128xf32>
    %172 = arith.addf %170, %171 : vector<8x128xf32>
    %c0_62 = arith.constant 0 : index
    %c0_63 = arith.constant 0 : index
    %173 = vector.load %arg8[%c0_62, %c0_63] : memref<8x128xf32, #tpu.memory_space<vmem>>, vector<8x128xf32>
    tpu.vector_store %arg8[%c0_62, %c0_63], %172 {strides = array<i32>} : memref<8x128xf32, #tpu.memory_space<vmem>>, vector<8x128xf32>,
    %174 = arith.index_cast %c3_i32 : i32 to index
    %c0_64 = arith.constant 0 : index
    %c0_65 = arith.constant 0 : index
    %175 = vector.load %arg7[%174, %c0_64, %c0_65] : memref<4x8x128xf32, #tpu.memory_space<vmem>>, vector<1x8x128xf32>
    %176 = vector.shape_cast %175 : vector<1x8x128xf32> to vector<8x128xf32>
    %177 = vector.shape_cast %172 : vector<8x128xf32> to vector<1x8x128xf32>
    tpu.vector_store %arg7[%174, %c0_64, %c0_65], %177 {strides = array<i32>} : memref<4x8x128xf32, #tpu.memory_space<vmem>>, vector<1x8x128xf32>,
    %c4_i32 = arith.constant 4 : i32
    return
  }
  func.func @transform_0(%arg0: i32, %arg1: i32) -> (i32, i32, i32) {
    %c0_i32 = arith.constant 0 : i32
    %c0_i32_0 = arith.constant 0 : i32
    return %arg1, %arg0, %c0_i32 : i32, i32, i32
  }
  func.func @transform_1(%arg0: i32, %arg1: i32) -> (i32, i32, i32) {
    %c0_i32 = arith.constant 0 : i32
    %c0_i32_0 = arith.constant 0 : i32
    return %arg1, %arg0, %c0_i32 : i32, i32, i32
  }
  func.func @transform_2(%arg0: i32, %arg1: i32) -> (i32, i32) {
    %c0_i32 = arith.constant 0 : i32
    %c0_i32_0 = arith.constant 0 : i32
    return %arg0, %c0_i32 : i32, i32
  }
  func.func @transform_3(%arg0: i32, %arg1: i32) -> (i32, i32) {
    %c0_i32 = arith.constant 0 : i32
    %c0_i32_0 = arith.constant 0 : i32
    %c0_i32_1 = arith.constant 0 : i32
    return %c0_i32, %c0_i32_0 : i32, i32
  }
  func.func @transform_4(%arg0: i32, %arg1: i32) -> (i32, i32) {
    %c0_i32 = arith.constant 0 : i32
    %c0_i32_0 = arith.constant 0 : i32
    %c0_i32_1 = arith.constant 0 : i32
    return %c0_i32, %c0_i32_0 : i32, i32
  }
  func.func @transform_5(%arg0: i32, %arg1: i32) -> (i32, i32, i32) {
    %c0_i32 = arith.constant 0 : i32
    %c0_i32_0 = arith.constant 0 : i32
    return %arg1, %arg0, %c0_i32 : i32, i32, i32
  }
}

</mosaic_0001>

<bundles_post_ra>
// kernel: end_rnn_lidar_forward.2
= control target key start
LH: loop header
LB: loop body
LE: loop exit
PB: predicated region body
PF: predicated region fallthrough
CT: control target
= control target key end

     0   :  { %10 = vsyncpa [#allocation3], 0  ;;  %s852_s0 = inlined_call_operand.vmem [shape: f32[32,32], index: 0, kind: input, shape index: {}]   ;;  %s853_s1 = inlined_call_operand.hbm [shape: f32[32,128], index: 1, kind: input, shape index: {}]   ;;  %s854_s2 = inlined_call_operand.hbm [shape: f32[1,128], index: 2, kind: input, shape index: {}]   ;;  %s855_s3 = inlined_call_operand.hbm [shape: f32[128,384], index: 3, kind: input, shape index: {}]   ;;  %s856_s4 = inlined_call_operand.hbm [shape: f32[1,384], index: 4, kind: input, shape index: {}]   ;;  %s857_s5 = inlined_call_operand.vmem [shape: f32[32,384], index: 5, kind: output, shape index: {}]  }
   0x1   :  { %11 = vsyncpa [#allocation5], 0 }
   0x2   :  { %12 = vsyncpa [#allocation8], 0  ;;  %s706_s18 = smov [#allocation4]   ;;  %s707_s20 = smov [#allocation2]  }
   0x3   :  { %s33_s19 = sshll.u32 %s706_s18, 4  ;;  %s20_s21 = sshll.u32 %s707_s20, 4  ;;  %s34_s19 = int_to_ptr.vmem [resolvable:$true] %s33_s19  ;;  %s745_s21 = int_to_ptr.vmem [resolvable:$true] %s20_s21 }
   0x4   :  { %s612_s24 = scalar_lea.hbm %s854_s2, 16 }
   0x5   :  { %p613_p0 = scmp.ne.s32.totalorder %s854_s2, %s612_s24  ;;  %p616_p1 = scmp.lt.u32.totalorder %s612_s24, %s854_s2 }
   0x7   :  { %p618_p2 = pnand %p616_p1, %p613_p0 }
   0x9   :  { %621 = shalt.err (!%p618_p2)
}
   0xa   :  { %s622_s29 = scalar_lea.vmem %s34_s19, 16  ;;  %s626_s30 = scalar_lea.vmem %s34_s19, 32 }
   0xb   :  { %p623_p3 = scmp.ne.s32.totalorder %s34_s19, %s622_s29  ;;  %p627_p4 = scmp.lt.s32.totalorder %s34_s19, %s34_s19 }
   0xc   :  { %p628_p5 = scmp.lt.s32.totalorder %s626_s30, %s622_s29 }
   0xe   :  { %p629_p6 = por %p628_p5, %p627_p4 }
  0x10   :  { %p630_p7 = pnand %p629_p6, %p623_p3 }
  0x12   :  { %633 = shalt.err (!%p630_p7)
}
  0x13   :  { %36 = dma.hbm_to_vmem [thread:$0]  %s854_s2, 16, %s34_s19, [#allocation5]  }
  0x14   :  { %s634_s10 = scalar_lea.hbm %s853_s1, 512 }
  0x15   :  { %p635_p8 = scmp.ne.s32.totalorder %s853_s1, %s634_s10  ;;  %p638_p9 = scmp.lt.u32.totalorder %s634_s10, %s853_s1 }
  0x17   :  { %p640_p10 = pnand %p638_p9, %p635_p8 }
  0x19   :  { %643 = shalt.err (!%p640_p10)
}
  0x1a   :  { %s644_s15 = scalar_lea.vmem %s745_s21, 512  ;;  %p649_p12 = scmp.lt.s32.totalorder %s745_s21, %s745_s21 }
  0x1b   :  { %p645_p11 = scmp.ne.s32.totalorder %s745_s21, %s644_s15  ;;  %p650_p13 = scmp.lt.s32.totalorder %s644_s15, %s644_s15 }
  0x1d   :  { %p651_p0 = por %p650_p13, %p649_p12 }
  0x1f   :  { %p652_p1 = pnand %p651_p0, %p645_p11 }
  0x21   :  { %655 = shalt.err (!%p652_p1)
}
  0x22   :  { %s708_s2 = smov 128   ;;  %s709_s16 = smov 8  }
  0x23   :  { %26 = dma.hbm_to_vmem [thread:$0]  %s853_s1, 512, %s745_s21, [#allocation3], %s708_s2, %s708_s2, %s709_s16  }
  0x24   :  { %s710_s19 = smov [#allocation6]   ;;  %s656_s24 = scalar_lea.hbm %s855_s3, 6144 }
  0x25   :  { %s42_s20 = sshll.u32 %s710_s19, 4  ;;  %p657_p2 = scmp.ne.s32.totalorder %s855_s3, %s656_s24  ;;  %s43_s20 = int_to_ptr.vmem [resolvable:$true] %s42_s20 }
  0x26   :  { %p660_p3 = scmp.lt.u32.totalorder %s656_s24, %s855_s3 }
  0x28   :  { %p662_p4 = pnand %p660_p3, %p657_p2 }
  0x2a   :  { %665 = shalt.err (!%p662_p4)
}
  0x2b   :  { %s666_s29 = scalar_lea.vmem %s43_s20, 6144  ;;  %p671_p6 = scmp.lt.s32.totalorder %s43_s20, %s43_s20 }
  0x2c   :  { %p667_p5 = scmp.ne.s32.totalorder %s43_s20, %s666_s29  ;;  %p672_p7 = scmp.lt.s32.totalorder %s666_s29, %s666_s29 }
  0x2e   :  { %p673_p8 = por %p672_p7, %p671_p6 }
  0x30   :  { %p674_p9 = pnand %p673_p8, %p667_p5 }
  0x32   :  { %677 = shalt.err (!%p674_p9)
}
  0x33   :  { %s711_s1 = smov 384   ;;  %s712_s21 = smov 24  }
  0x34   :  { %48 = dma.hbm_to_vmem [thread:$0]  %s855_s3, 6144, %s43_s20, [#allocation5], %s711_s1, %s711_s1, %s712_s21  }
  0x35   :  { %s713_s7 = smov [#allocation7]   ;;  %s678_s11 = scalar_lea.hbm %s856_s4, 48 }
  0x36   :  { %s55_s8 = sshll.u32 %s713_s7, 4  ;;  %p679_p10 = scmp.ne.s32.totalorder %s856_s4, %s678_s11  ;;  %s56_s8 = int_to_ptr.vmem [resolvable:$true] %s55_s8 }
  0x37   :  { %p682_p11 = scmp.lt.u32.totalorder %s678_s11, %s856_s4 }
  0x39   :  { %p684_p12 = pnand %p682_p11, %p679_p10 }
  0x3b   :  { %687 = shalt.err (!%p684_p12)
}
  0x3c   :  { %s688_s2 = scalar_lea.vmem %s56_s8, 48  ;;  %s692_s3 = scalar_lea.vmem %s56_s8, 64 }
  0x3d   :  { %p689_p13 = scmp.ne.s32.totalorder %s56_s8, %s688_s2  ;;  %p693_p0 = scmp.lt.s32.totalorder %s56_s8, %s56_s8 }
  0x3e   :  { %p694_p1 = scmp.lt.s32.totalorder %s692_s3, %s688_s2 }
  0x40   :  { %p695_p2 = por %p694_p1, %p693_p0 }
  0x42   :  { %p696_p3 = pnand %p695_p2, %p689_p13 }
  0x44   :  { %699 = shalt.err (!%p696_p3)
}
  0x45   :  { %58 = dma.hbm_to_vmem [thread:$0]  %s856_s4, 48, %s56_s8, [#allocation8]  }
  0x46   :  { %700 = dma.done.wait [#allocation3], 512  }
  0x47   :  { %701 = vsyncadd [#allocation3], 4294966784 }
  0x48   :  { %702 = dma.done.wait [#allocation5], 6160  }
  0x49   :  { %703 = vsyncadd [#allocation5], 4294961136 }
  0x4a   :  { %704 = dma.done.wait [#allocation8], 48  }
  0x4b   :  { %705 = vsyncadd [#allocation8], 4294967248  ;;  %vm86_vm0 = vcmask 261120   ;;  %v75_v0 = vld [vmem:[#allocation2] sm:$0xff]  ;;  %v76_v1 = vld [vmem:[#allocation2 + $0x8] sm:$0xff] }
  0x4c   :  { %v77_v2 = vld [vmem:[#allocation2 + $0x10] sm:$0xff]  ;;  %v531_v3 = vpack.c.bf16 %v76_v1, %v75_v0  ;;  %v78_v4 = vld [vmem:[#allocation2 + $0x18] sm:$0xff]  ;;  %v71_v5 = vld [vmem:[%s852_s0] sm:$0xff] }
  0x4d   :  { %v535_v6 = vpack.c.bf16 %v78_v4, %v77_v2  ;;  %487 = vmatprep.mubr.msk.f32.mxu0 %vm86_vm0, %v71_v5  ;;  %v189_v7 = vld [vmem:[#allocation6 + $0x8] sm:$0xff]  ;;  %v192_v8 = vld [vmem:[#allocation6 + $0x20] sm:$0xff]  ;;  %v191_v10 = vld [vmem:[#allocation6 + $0x18] sm:$0xff] }
  0x4e   :  { %532 = vmatprep.subr.bf16.mxu0 %v531_v3  ;;  %v188_v9 = vld [vmem:[#allocation6] sm:$0xff]  ;;  %v539_v11 = vpack.c.bf16 %v192_v8, %v189_v7  ;;  %v190_v13 = vld [vmem:[#allocation6 + $0x10] sm:$0xff]  ;;  %v193_v14 = vld [vmem:[#allocation6 + $0x28] sm:$0xff] }
  0x4f   :  { %534 = vmatpush3.bf16.msra.mxu0 %v531_v3  ;;  %v541_v12 = vpack.c.bf16 %v191_v10, %v188_v9  ;;  %v195_v15 = vld [vmem:[#allocation6 + $0x38] sm:$0xff]  ;;  %v571_v16 = vpack.c.bf16 %v193_v14, %v190_v13  ;;  %v198_v17 = vld [vmem:[#allocation6 + $0x50] sm:$0xff]  ;;  %v197_v19 = vld [vmem:[#allocation6 + $0x48] sm:$0xff] }
  0x50   :  { %536 = vmatprep.subr.bf16.mxu0 %v535_v6  ;;  %v194_v18 = vld [vmem:[#allocation6 + $0x30] sm:$0xff]  ;;  %540 = vmatprep.subr.bf16.mxu1 %v539_v11  ;;  %v543_v20 = vpack.c.bf16 %v198_v17, %v195_v15  ;;  %v196_v21 = vld [vmem:[#allocation6 + $0x40] sm:$0xff]  ;;  %v199_v22 = vld [vmem:[#allocation6 + $0x58] sm:$0xff] }
  0x51   :  { %v201_v23 = vld [vmem:[#allocation6 + $0x68] sm:$0xff]  ;;  %542 = vmatpush1.bf16.msra.mxu1 %v541_v12  ;;  %v545_v24 = vpack.c.bf16 %v197_v19, %v194_v18  ;;  %v204_v25 = vld [vmem:[#allocation6 + $0x80] sm:$0xff]  ;;  %v203_v28 = vld [vmem:[#allocation6 + $0x78] sm:$0xff]  ;;  %v575_v30 = vpack.c.bf16 %v199_v22, %v196_v21  ;;  %v714_v18 = vmov 0.0  }
  0x52   :  { %v72_v26 = vld [vmem:[%s852_s0 + $0x8] sm:$0xff]  ;;  %544 = vmatprep.subr.bf16.mxu1 %v543_v20  ;;  %v73_v29 = vld [vmem:[%s852_s0 + $0x10] sm:$0xff]  ;;  %v547_v31 = vpack.c.bf16 %v204_v25, %v201_v23  ;;  %v207_v32 = vld [vmem:[#allocation6 + $0x98] sm:$0xff]  ;;  %317 = vmatprep.mubr.f32.mxu1 %v714_v18 }
  0x53   :  { %538 = vmatpush3.bf16.msra.mxu0 %v535_v6  ;;  %v200_v27 = vld [vmem:[#allocation6 + $0x60] sm:$0xff]  ;;  %v210_v33 = vld [vmem:[#allocation6 + $0xb0] sm:$0xff]  ;;  %v205_v35 = vld [vmem:[#allocation6 + $0x88] sm:$0xff] }
  0x54   :  { %572 = vmatprep.subr.bf16.mxu0 %v571_v16  ;;  %v202_v34 = vld [vmem:[#allocation6 + $0x70] sm:$0xff]  ;;  %v549_v36 = vpack.c.bf16 %v203_v28, %v200_v27  ;;  %v551_v38 = vpack.c.bf16 %v210_v33, %v207_v32  ;;  %v209_v40 = vld [vmem:[#allocation6 + $0xa8] sm:$0xff]  ;;  %v216_v43 = vld [vmem:[#allocation6 + $0xe0] sm:$0xff]  ;;  %v238_v32 = vlaneseq }
  0x55   :  { %546 = vmatpush1.bf16.msra.mxu1 %v545_v24  ;;  %v74_v37 = vld [vmem:[%s852_s0 + $0x18] sm:$0xff]  ;;  %v579_v41 = vpack.c.bf16 %v205_v35, %v202_v34  ;;  %v213_v42 = vld [vmem:[#allocation6 + $0xc8] sm:$0xff]  ;;  %v208_v44 = vld [vmem:[#allocation6 + $0xa0] sm:$0xff] }
  0x56   :  { %488 = vmatmul.mubr.msk.f32.vlgmr.msra.gmra.mrb[0].mxu0 %vm86_vm0, %v72_v26  ;;  %v206_v39 = vld [vmem:[#allocation6 + $0x90] sm:$0xff]  ;;  %548 = vmatprep.subr.bf16.mxu1 %v547_v31  ;;  %v211_v45 = vld [vmem:[#allocation6 + $0xb8] sm:$0xff]  ;;  %v555_v47 = vpack.c.bf16 %v216_v43, %v213_v42  ;;  %v212_v48 = vld [vmem:[#allocation6 + $0xc0] sm:$0xff]  ;;  %v239_v33 = vshrl.u32 %v238_v32, 7 }
  0x57   :  { %490 = vmatprep.mubr.msk.f32.mxu0 %vm86_vm0, %v73_v29  ;;  %574 = vmatpush3.bf16.msra.mxu0 %v571_v16  ;;  %v553_v46 = vpack.c.bf16 %v209_v40, %v206_v39  ;;  %v215_v49 = vld [vmem:[#allocation6 + $0xd8] sm:$0xff]  ;;  %v583_v50 = vpack.c.bf16 %v211_v45, %v208_v44  ;;  %v222_v52 = vld [vmem:[#allocation6 + $0x110] sm:$0xff]  ;;  %v217_v54 = vld [vmem:[#allocation6 + $0xe8] sm:$0xff] }
  0x58   :  { %576 = vmatprep.subr.bf16.mxu0 %v575_v30  ;;  %v219_v51 = vld [vmem:[#allocation6 + $0xf8] sm:$0xff]  ;;  %v214_v53 = vld [vmem:[#allocation6 + $0xd0] sm:$0xff]  ;;  %v557_v55 = vpack.c.bf16 %v215_v49, %v212_v48  ;;  %v221_v58 = vld [vmem:[#allocation6 + $0x108] sm:$0xff]  ;;  %v240_v34 = vsub.s32 0, %v239_v33 }
  0x59   :  { %550 = vmatpush1.bf16.msra.mxu1 %v549_v36  ;;  %v559_v56 = vpack.c.bf16 %v222_v52, %v219_v51  ;;  %v218_v57 = vld [vmem:[#allocation6 + $0xf0] sm:$0xff]  ;;  %v587_v59 = vpack.c.bf16 %v217_v54, %v214_v53  ;;  %v225_v60 = vld [vmem:[#allocation6 + $0x128] sm:$0xff]  ;;  %v228_v61 = vld [vmem:[#allocation6 + $0x140] sm:$0xff]  ;;  %v244_v36 = vsub.s32 1, %v239_v33 }
  0x5a   :  { %491 = vmatmul.mubr.msk.f32.gmra.mrb[2].mxu0 %vm86_vm0, %v74_v37  ;;  %552 = vmatprep.subr.bf16.mxu1 %v551_v38  ;;  %v220_v62 = vld [vmem:[#allocation6 + $0x100] sm:$0xff]  ;;  %v223_v63 = vld [vmem:[#allocation6 + $0x118] sm:$0xff]  ;;  %v561_v0 = vpack.c.bf16 %v221_v58, %v218_v57  ;;  %v563_v1 = vpack.c.bf16 %v228_v61, %v225_v60  ;;  %v226_v5 = vld [vmem:[#allocation6 + $0x130] sm:$0xff]  ;;  %v248_v37 = vsub.s32 2, %v239_v33 }
  0x5b   :  { %578 = vmatpush3.bf16.msra.mxu0 %v575_v30  ;;  %v224_v2 = vld [vmem:[#allocation6 + $0x120] sm:$0xff]  ;;  %v227_v3 = vld [vmem:[#allocation6 + $0x138] sm:$0xff]  ;;  %v591_v4 = vpack.c.bf16 %v223_v63, %v220_v62  ;;  %v229_v6 = vld [vmem:[#allocation6 + $0x148] sm:$0xff] }
  0x5c   :  { %580 = vmatprep.subr.bf16.mxu0 %v579_v41  ;;  %v565_v7 = vpack.c.bf16 %v227_v3, %v224_v2  ;;  %v595_v8 = vpack.c.bf16 %v229_v6, %v226_v5  ;;  %v231_v9 = vld [vmem:[#allocation6 + $0x158] sm:$0xff]  ;;  %v234_v10 = vld [vmem:[#allocation6 + $0x170] sm:$0xff]  ;;  %v233_v13 = vld [vmem:[#allocation6 + $0x168] sm:$0xff] }
  0x5d   :  { %554 = vmatpush1.bf16.msra.mxu1 %v553_v46  ;;  %v567_v11 = vpack.c.bf16 %v234_v10, %v231_v9  ;;  %v230_v12 = vld [vmem:[#allocation6 + $0x150] sm:$0xff]  ;;  %v232_v15 = vld [vmem:[#allocation6 + $0x160] sm:$0xff]  ;;  %v235_v16 = vld [vmem:[#allocation6 + $0x178] sm:$0xff] }
  0x5e   :  { %556 = vmatprep.subr.bf16.mxu1 %v555_v47  ;;  %v569_v14 = vpack.c.bf16 %v233_v13, %v230_v12  ;;  %v599_v17 = vpack.c.bf16 %v235_v16, %v232_v15  ;;  %v446_v19 = vld [vmem:[#allocation4] ss:$0 sm:$0xff]  ;;  %v236_v35 = vld [vmem:[#allocation7] sm:$0x7] }
  0x5f   :  { %582 = vmatpush3.bf16.msra.mxu0 %v579_v41  ;;  %v241_v38 = vrot.slane %v236_v35, %v240_v34  ;;  %v245_v39 = vrot.slane %v236_v35, %v244_v36  ;;  %v249_v40 = vrot.slane %v236_v35, %v248_v37 }
  0x60   :  { %584 = vmatprep.subr.bf16.mxu0 %v583_v50 }
  0x61   :  { %558 = vmatpush1.bf16.msra.mxu1 %v557_v55 }
  0x62   :  { %560 = vmatprep.subr.bf16.mxu1 %v559_v56 }
  0x63   :  { %586 = vmatpush3.bf16.msra.mxu0 %v583_v50 }
  0x64   :  { %588 = vmatprep.subr.bf16.mxu0 %v587_v59 }
  0x65   :  { %562 = vmatpush1.bf16.msra.mxu1 %v561_v0 }
  0x66   :  { %564 = vmatprep.subr.bf16.mxu1 %v563_v1 }
  0x67   :  { %590 = vmatpush3.bf16.msra.mxu0 %v587_v59 }
  0x68   :  { %592 = vmatprep.subr.bf16.mxu0 %v591_v4 }
  0x69   :  { %566 = vmatpush1.bf16.msra.mxu1 %v565_v7 }
  0x6a   :  { %568 = vmatprep.subr.bf16.mxu1 %v567_v11 }
  0x6b   :  { %594 = vmatpush3.bf16.msra.mxu0 %v591_v4 }
  0x6c   :  { %596 = vmatprep.subr.bf16.mxu0 %v595_v8 }
  0x6d   :  { %570 = vmatpush1.bf16.msra.mxu1 %v569_v14 }
  0x6f   :  { %598 = vmatpush3.bf16.msra.mxu0 %v595_v8 }
  0x70   :  { %600 = vmatprep.subr.bf16.mxu0 %v599_v17 }
  0x73   :  { %602 = vmatpush3.bf16.msra.mxu0 %v599_v17 }
 0x129   :  { %v489_v20 = vpop.f32.mrb[0].mxu0 }
 0x12a   :  { %v171_v21 = vadd.f32 %v489_v20, %v446_v19  ;;  %v165_v22 = vpop.f32.mrb[1].mxu0 }
 0x12b   :  { %v166_v23 = vadd.f32 %v446_v19, %v165_v22 }
 0x12c   :  { %v185_v26 = vmax.f32 %v171_v21, 0.0 }
 0x12d   :  { %v184_v24 = vmax.f32 %v166_v23, 0.0  ;;  %v492_v25 = vpop.f32.mrb[2].mxu0 }
 0x12e   :  { %v181_v27 = vadd.f32 %v492_v25, %v446_v19  ;;  %v175_v28 = vpop.f32.mrb[3].mxu0 }
 0x12f   :  { %v176_v29 = vadd.f32 %v446_v19, %v175_v28  ;;  %318 = vmatmul.mubr.f32.vlgmr.msra.gmra.mrb[0].mxu1 %v184_v24  ;;  %525 = vmatprep.mubr.f32.mxu0 %v184_v24 }
 0x130   :  { %v187_v30 = vmax.f32 %v181_v27, 0.0  ;;  %526 = vmatmul.mubr.f32.vlgmr.msra.gmra.mrb[4].mxu0 %v185_v26  ;;  %323 = vmatprep.mubr.f32.mxu1 %v714_v18 }
 0x131   :  { %v186_v31 = vmax.f32 %v176_v29, 0.0 }
 0x133   :  { %324 = vmatmul.mubr.f32.gmra.mrb[2].mxu1 %v185_v26  ;;  %528 = vmatprep.mubr.f32.mxu0 %v186_v31 }
 0x134   :  { %529 = vmatmul.mubr.f32.gmra.mrb[6].mxu0 %v187_v30  ;;  %329 = vmatprep.mubr.f32.mxu1 %v714_v18 }
 0x137   :  { %330 = vmatmul.mubr.f32.gmra.mrb[4].mxu1 %v186_v31 }
 0x138   :  { %335 = vmatprep.mubr.f32.mxu1 %v714_v18 }
 0x13b   :  { %336 = vmatmul.mubr.f32.gmra.mrb[6].mxu1 %v187_v30 }
 0x202   :  { %v319_v41 = vpop.f32.mrb[0].mxu1 }
 0x203   :  { %v320_v42 = vadd.f32 %v319_v41, %v241_v38  ;;  %v321_v43 = vpop.f32.mrb[1].mxu1  ;;  %v527_v44 = vpop.f32.mrb[4].mxu0 }
 0x204   :  { %v322_v45 = vadd.f32 %v321_v43, %v245_v39  ;;  %v414_v46 = vadd.f32 %v527_v44, %v249_v40  ;;  %v408_v47 = vpop.f32.mrb[5].mxu0 }
 0x205   :  { %427 = vst [vmem:[%s857_s5] sm:$0xff] %v320_v42  ;;  %v409_v48 = vadd.f32 %v408_v47, %v249_v40 }
 0x206   :  { %428 = vst [vmem:[%s857_s5 + $0x8] sm:$0xff] %v322_v45  ;;  %432 = vst [vmem:[%s857_s5 + $0x28] sm:$0xff] %v414_v46  ;;  %v325_v49 = vpop.f32.mrb[2].mxu1 }
 0x207   :  { %429 = vst [vmem:[%s857_s5 + $0x10] sm:$0xff] %v409_v48  ;;  %v326_v50 = vadd.f32 %v325_v49, %v241_v38  ;;  %v327_v51 = vpop.f32.mrb[3].mxu1  ;;  %v530_v52 = vpop.f32.mrb[6].mxu0 }
 0x208   :  { %v328_v53 = vadd.f32 %v327_v51, %v245_v39  ;;  %v424_v54 = vadd.f32 %v530_v52, %v249_v40  ;;  %v418_v55 = vpop.f32.mrb[7].mxu0 }
 0x209   :  { %430 = vst [vmem:[%s857_s5 + $0x18] sm:$0xff] %v326_v50  ;;  %v419_v56 = vadd.f32 %v418_v55, %v249_v40 }
 0x20a   :  { %431 = vst [vmem:[%s857_s5 + $0x20] sm:$0xff] %v328_v53  ;;  %438 = vst [vmem:[%s857_s5 + $0x58] sm:$0xff] %v424_v54  ;;  %v331_v57 = vpop.f32.mrb[4].mxu1 }
 0x20b   :  { %435 = vst [vmem:[%s857_s5 + $0x40] sm:$0xff] %v419_v56  ;;  %v332_v58 = vadd.f32 %v331_v57, %v241_v38  ;;  %v333_v59 = vpop.f32.mrb[5].mxu1 }
 0x20c   :  { %v334_v60 = vadd.f32 %v333_v59, %v245_v39 }
 0x20d   :  { %433 = vst [vmem:[%s857_s5 + $0x30] sm:$0xff] %v332_v58 }
 0x20e   :  { %434 = vst [vmem:[%s857_s5 + $0x38] sm:$0xff] %v334_v60  ;;  %v337_v61 = vpop.f32.mrb[6].mxu1 }
 0x20f   :  { %v338_v62 = vadd.f32 %v337_v61, %v241_v38  ;;  %v339_v63 = vpop.f32.mrb[7].mxu1 }
 0x210   :  { %v340_v0 = vadd.f32 %v339_v63, %v245_v39 }
 0x211   :  { %436 = vst [vmem:[%s857_s5 + $0x48] sm:$0xff] %v338_v62 }
 0x212   :  { %437 = vst [vmem:[%s857_s5 + $0x50] sm:$0xff] %v340_v0 }
 0x213   :  { %443 = vsyncpa [#allocation3], 1 }
 0x214   :  { %444 = vsyncpa [#allocation5], 1 }
 0x215   :  { %445 = vsyncpa [#allocation8], 1 }

// kernel: end_rnn_lidar_forward.3
= control target key start
LH: loop header
LB: loop body
LE: loop exit
PB: predicated region body
PF: predicated region fallthrough
CT: control target
= control target key end

     0   :  { %v1444_v0 = vmov 0   ;;  %v1445_v4 = vmov 0.0|0.0   ;;  %v1446_v13 = vmov 0.0   ;;  %vm1447_vm0 = vmmov 0   ;;  %s1897_s1 = inlined_call_operand.vmem [shape: f32[4,8,1], index: 1, kind: input, shape index: {}]   ;;  %s1898_s3 = inlined_call_operand.vmem [shape: f32[128,384], index: 3, kind: input, shape index: {}]   ;;  %s1899_s2 = inlined_call_operand.vmem [shape: f32[8,128], index: 2, kind: input, shape index: {}]   ;;  %s1900_s0 = inlined_call_operand.vmem [shape: f32[4,8,384], index: 0, kind: input, shape index: {}]   ;;  %s1901_s4 = inlined_call_operand.vmem [shape: f32[1,128], index: 4, kind: input, shape index: {}]   ;;  %s1902_s5 = inlined_call_operand.vmem [shape: f32[4,8,128], index: 5, kind: output, shape index: {}]  }
   0x1   :  { %1402 = vset.pattern.permute.xlu0 %v1444_v0  ;;  %v33_v1 = vld [vmem:[%s1897_s1] sm:$0xff]  ;;  %v945_v2 = vld [vmem:[%s1897_s1 + $0x8] sm:$0xff]  ;;  %1206 = vmatprep.subr.bf16.mxu1 %v1445_v4  ;;  %v44_v7 = vld [vmem:[%s1898_s3 + $0x18] sm:$0xff] }
   0x2   :  { %v42_v3 = vld [vmem:[%s1898_s3 + $0x8] sm:$0xff]  ;;  %37 = vperm.xlu0 %1402, %v33_v1   ;;  %v45_v5 = vld [vmem:[%s1898_s3 + $0x20] sm:$0xff]  ;;  %1403 = vset.pattern.permute.xlu1 %v1444_v0  ;;  %v43_v10 = vld [vmem:[%s1898_s3 + $0x10] sm:$0xff] }
   0x3   :  { %v41_v6 = vld [vmem:[%s1898_s3] sm:$0xff]  ;;  %v1497_v8 = vpack.c.bf16 %v45_v5, %v42_v3  ;;  %v46_v11 = vld [vmem:[%s1898_s3 + $0x28] sm:$0xff]  ;;  %v48_v12 = vld [vmem:[%s1898_s3 + $0x38] sm:$0xff]  ;;  %153 = vmatprep.mubr.f32.mxu0 %v1446_v13  ;;  %1066 = vmatprep.mubr.msk.f32.mxu1 %vm1447_vm0, %v1446_v13 }
   0x4   :  { %v1499_v9 = vpack.c.bf16 %v44_v7, %v41_v6  ;;  %v1513_v14 = vpack.c.bf16 %v46_v11, %v43_v10  ;;  %v51_v15 = vld [vmem:[%s1898_s3 + $0x50] sm:$0xff]  ;;  %v50_v17 = vld [vmem:[%s1898_s3 + $0x48] sm:$0xff]  ;;  %v49_v19 = vld [vmem:[%s1898_s3 + $0x40] sm:$0xff] }
   0x5   :  { %v47_v16 = vld [vmem:[%s1898_s3 + $0x30] sm:$0xff]  ;;  %1175 = vmatprep.subr.bf16.mxu0 %v1497_v8  ;;  %v1525_v18 = vpack.c.bf16 %v51_v15, %v48_v12  ;;  %v52_v20 = vld [vmem:[%s1898_s3 + $0x58] sm:$0xff]  ;;  %v54_v21 = vld [vmem:[%s1898_s3 + $0x68] sm:$0xff] }
   0x6   :  { %262 = vperm.xlu0 %1402, %v945_v2   ;;  %1177 = vmatpush1.bf16.msra.mxu0 %v1499_v9  ;;  %v1537_v22 = vpack.c.bf16 %v50_v17, %v47_v16  ;;  %v57_v23 = vld [vmem:[%s1898_s3 + $0x80] sm:$0xff]  ;;  %v1544_v24 = vpack.c.bf16 %v52_v20, %v49_v19  ;;  %v56_v27 = vld [vmem:[%s1898_s3 + $0x78] sm:$0xff]  ;;  %v55_v28 = vld [vmem:[%s1898_s3 + $0x70] sm:$0xff] }
   0x7   :  { %1208 = vmatpush3.bf16.msra.mxu1 %v1513_v14  ;;  %1179 = vmatprep.subr.bf16.mxu0 %v1525_v18  ;;  %v1546_v25 = vpack.c.bf16 %v57_v23, %v54_v21  ;;  %v53_v26 = vld [vmem:[%s1898_s3 + $0x60] sm:$0xff]  ;;  %v58_v29 = vld [vmem:[%s1898_s3 + $0x88] sm:$0xff]  ;;  %v60_v30 = vld [vmem:[%s1898_s3 + $0x98] sm:$0xff] }
   0x8   :  { %1209 = vmatprep.subr.bf16.mxu1 %v1445_v4  ;;  %v63_v31 = vld [vmem:[%s1898_s3 + $0xb0] sm:$0xff]  ;;  %v1568_v32 = vpack.c.bf16 %v56_v27, %v53_v26  ;;  %v1572_v33 = vpack.c.bf16 %v58_v29, %v55_v28  ;;  %v62_v36 = vld [vmem:[%s1898_s3 + $0xa8] sm:$0xff]  ;;  %v61_v37 = vld [vmem:[%s1898_s3 + $0xa0] sm:$0xff] }
   0x9   :  { %v1574_v34 = vpack.c.bf16 %v63_v31, %v60_v30  ;;  %v59_v35 = vld [vmem:[%s1898_s3 + $0x90] sm:$0xff]  ;;  %v64_v38 = vld [vmem:[%s1898_s3 + $0xb8] sm:$0xff]  ;;  %v66_v39 = vld [vmem:[%s1898_s3 + $0xc8] sm:$0xff] }
   0xa   :  { %1181 = vmatpush1.bf16.msra.mxu0 %v1537_v22  ;;  %v69_v40 = vld [vmem:[%s1898_s3 + $0xe0] sm:$0xff]  ;;  %v1596_v41 = vpack.c.bf16 %v62_v36, %v59_v35  ;;  %v1600_v42 = vpack.c.bf16 %v64_v38, %v61_v37  ;;  %v68_v45 = vld [vmem:[%s1898_s3 + $0xd8] sm:$0xff]  ;;  %v67_v46 = vld [vmem:[%s1898_s3 + $0xd0] sm:$0xff] }
   0xb   :  { %1211 = vmatpush3.bf16.msra.mxu1 %v1544_v24  ;;  %1183 = vmatprep.subr.bf16.mxu0 %v1546_v25  ;;  %v1602_v43 = vpack.c.bf16 %v69_v40, %v66_v39  ;;  %v65_v44 = vld [vmem:[%s1898_s3 + $0xc0] sm:$0xff]  ;;  %v70_v47 = vld [vmem:[%s1898_s3 + $0xe8] sm:$0xff]  ;;  %v72_v48 = vld [vmem:[%s1898_s3 + $0xf8] sm:$0xff] }
   0xc   :  { %1212 = vmatprep.subr.bf16.mxu1 %v1445_v4  ;;  %v75_v49 = vld [vmem:[%s1898_s3 + $0x110] sm:$0xff]  ;;  %v1624_v50 = vpack.c.bf16 %v68_v45, %v65_v44  ;;  %v1628_v51 = vpack.c.bf16 %v70_v47, %v67_v46  ;;  %v74_v54 = vld [vmem:[%s1898_s3 + $0x108] sm:$0xff]  ;;  %v73_v55 = vld [vmem:[%s1898_s3 + $0x100] sm:$0xff] }
   0xd   :  { %v1630_v52 = vpack.c.bf16 %v75_v49, %v72_v48  ;;  %v71_v53 = vld [vmem:[%s1898_s3 + $0xf0] sm:$0xff]  ;;  %v76_v56 = vld [vmem:[%s1898_s3 + $0x118] sm:$0xff]  ;;  %v78_v57 = vld [vmem:[%s1898_s3 + $0x128] sm:$0xff] }
   0xe   :  { %1185 = vmatpush1.bf16.msra.mxu0 %v1568_v32  ;;  %v81_v58 = vld [vmem:[%s1898_s3 + $0x140] sm:$0xff]  ;;  %v1652_v59 = vpack.c.bf16 %v74_v54, %v71_v53  ;;  %v1656_v60 = vpack.c.bf16 %v76_v56, %v73_v55  ;;  %v80_v63 = vld [vmem:[%s1898_s3 + $0x138] sm:$0xff]  ;;  %v79_v0 = vld [vmem:[%s1898_s3 + $0x130] sm:$0xff] }
   0xf   :  { %1214 = vmatpush3.bf16.msra.mxu1 %v1572_v33  ;;  %1187 = vmatprep.subr.bf16.mxu0 %v1574_v34  ;;  %v1658_v61 = vpack.c.bf16 %v81_v58, %v78_v57  ;;  %v77_v62 = vld [vmem:[%s1898_s3 + $0x120] sm:$0xff]  ;;  %v82_v1 = vld [vmem:[%s1898_s3 + $0x148] sm:$0xff]  ;;  %v84_v2 = vld [vmem:[%s1898_s3 + $0x158] sm:$0xff] }
  0x10   :  { %1215 = vmatprep.subr.bf16.mxu1 %v1445_v4  ;;  %v87_v3 = vld [vmem:[%s1898_s3 + $0x170] sm:$0xff]  ;;  %v1680_v5 = vpack.c.bf16 %v80_v63, %v77_v62  ;;  %v1684_v6 = vpack.c.bf16 %v82_v1, %v79_v0  ;;  %v86_v11 = vld [vmem:[%s1898_s3 + $0x168] sm:$0xff]  ;;  %v85_v12 = vld [vmem:[%s1898_s3 + $0x160] sm:$0xff] }
  0x11   :  { %v1686_v7 = vpack.c.bf16 %v87_v3, %v84_v2  ;;  %v83_v10 = vld [vmem:[%s1898_s3 + $0x150] sm:$0xff]  ;;  %v88_v15 = vld [vmem:[%s1898_s3 + $0x178] sm:$0xff]  ;;  %v24_v19 = vld [vmem:[%s1899_s2] sm:$0xff] }
  0x12   :  { %1189 = vmatpush1.bf16.msra.mxu0 %v1596_v41  ;;  %v1702_v16 = vpack.c.bf16 %v86_v11, %v83_v10  ;;  %v1706_v17 = vpack.c.bf16 %v88_v15, %v85_v12  ;;  %v952_v23 = vld [vmem:[%s1897_s1 + $0x10] sm:$0xff]  ;;  %v959_v26 = vld [vmem:[%s1897_s1 + $0x18] sm:$0xff]  ;;  %v230_v27 = vld [vmem:[%s1900_s0] sm:$0xff] }
  0x13   :  { %1217 = vmatpush3.bf16.msra.mxu1 %v1600_v42  ;;  %1191 = vmatprep.subr.bf16.mxu0 %v1602_v43  ;;  %v231_v35 = vld [vmem:[%s1900_s0 + $0x8] sm:$0xff]  ;;  %v1770_v46 = vld [vmem:[%s1901_s4] ss:$0 sm:$0xff]  ;;  %v232_v53 = vld [vmem:[%s1900_s0 + $0x10] sm:$0xff] }
  0x14   :  { %1218 = vmatprep.subr.bf16.mxu1 %v1445_v4  ;;  %489 = vperm.xlu1 %1403, %v952_v23   ;;  %v946_v3 = vld [vmem:[%s1900_s0 + $0x18] sm:$0xff] }
  0x16   :  { %1193 = vmatpush1.bf16.msra.mxu0 %v1624_v50 }
  0x17   :  { %1220 = vmatpush3.bf16.msra.mxu1 %v1628_v51  ;;  %1195 = vmatprep.subr.bf16.mxu0 %v1630_v52 }
  0x18   :  { %1221 = vmatprep.subr.bf16.mxu1 %v1445_v4  ;;  %716 = vperm.xlu1 %1403, %v959_v26  }
  0x1a   :  { %1197 = vmatpush1.bf16.msra.mxu0 %v1652_v59 }
  0x1b   :  { %1223 = vmatpush3.bf16.msra.mxu1 %v1656_v60  ;;  %1199 = vmatprep.subr.bf16.mxu0 %v1658_v61 }
  0x1c   :  { %1224 = vmatprep.subr.bf16.mxu1 %v1445_v4 }
  0x1e   :  { %1201 = vmatpush1.bf16.msra.mxu0 %v1680_v5 }
  0x1f   :  { %1226 = vmatpush3.bf16.msra.mxu1 %v1684_v6  ;;  %1203 = vmatprep.subr.bf16.mxu0 %v1686_v7 }
  0x20   :  { %1227 = vmatprep.subr.bf16.mxu1 %v1445_v4 }
  0x22   :  { %1205 = vmatpush1.bf16.msra.mxu0 %v1702_v16 }
  0x23   :  { %1229 = vmatpush3.bf16.msra.mxu1 %v1706_v17  ;;  %1231 = vmatprep.subr.bf16.mxu0 %v1497_v8 }
  0x24   :  { %1262 = vmatprep.subr.bf16.mxu1 %v1445_v4 }
  0x81   :  { %v38_v20 = vpop.permute.xlu0 %37 }
  0x82   :  { %v1716_v21 = vmul.f32 %v38_v20, %v24_v19  ;;  %v947_v19 = vld [vmem:[%s1900_s0 + $0x20] sm:$0xff] }
  0x84   :  { %154 = vmatmul.mubr.f32.vlgmr.msra.gmra.mrb[0].mxu0 %v1716_v21  ;;  %1067 = vmatmul.mubr.f32.vlgmr.msra.gmra.mrb[0].mxu1 %v1716_v21 }
  0x85   :  { %1233 = vmatpush1.bf16.msra.mxu0 %v1499_v9  ;;  %1264 = vmatpush3.bf16.msra.mxu1 %v1513_v14  ;;  %v263_v1 = vpop.permute.xlu0 %262 }
  0x86   :  { %1235 = vmatprep.subr.bf16.mxu0 %v1525_v18  ;;  %1265 = vmatprep.subr.bf16.mxu1 %v1445_v4 }
  0x87   :  { %378 = vmatprep.mubr.f32.mxu0 %v1446_v13  ;;  %1101 = vmatprep.mubr.msk.f32.mxu1 %vm1447_vm0, %v1446_v13 }
  0x89   :  { %1237 = vmatpush1.bf16.msra.mxu0 %v1537_v22  ;;  %1267 = vmatpush3.bf16.msra.mxu1 %v1544_v24 }
  0x8a   :  { %1239 = vmatprep.subr.bf16.mxu0 %v1546_v25  ;;  %1268 = vmatprep.subr.bf16.mxu1 %v1445_v4 }
  0x8d   :  { %1241 = vmatpush1.bf16.msra.mxu0 %v1568_v32  ;;  %1270 = vmatpush3.bf16.msra.mxu1 %v1572_v33 }
  0x8e   :  { %1243 = vmatprep.subr.bf16.mxu0 %v1574_v34  ;;  %1271 = vmatprep.subr.bf16.mxu1 %v1445_v4 }
  0x91   :  { %1245 = vmatpush1.bf16.msra.mxu0 %v1596_v41  ;;  %1273 = vmatpush3.bf16.msra.mxu1 %v1600_v42 }
  0x92   :  { %1247 = vmatprep.subr.bf16.mxu0 %v1602_v43  ;;  %1274 = vmatprep.subr.bf16.mxu1 %v1445_v4 }
  0x95   :  { %1249 = vmatpush1.bf16.msra.mxu0 %v1624_v50  ;;  %1276 = vmatpush3.bf16.msra.mxu1 %v1628_v51 }
  0x96   :  { %1251 = vmatprep.subr.bf16.mxu0 %v1630_v52  ;;  %1277 = vmatprep.subr.bf16.mxu1 %v1445_v4 }
  0x99   :  { %1253 = vmatpush1.bf16.msra.mxu0 %v1652_v59  ;;  %1279 = vmatpush3.bf16.msra.mxu1 %v1656_v60 }
  0x9a   :  { %1255 = vmatprep.subr.bf16.mxu0 %v1658_v61  ;;  %1280 = vmatprep.subr.bf16.mxu1 %v1445_v4 }
  0x9d   :  { %1257 = vmatpush1.bf16.msra.mxu0 %v1680_v5  ;;  %1282 = vmatpush3.bf16.msra.mxu1 %v1684_v6 }
  0x9e   :  { %1259 = vmatprep.subr.bf16.mxu0 %v1686_v7  ;;  %1283 = vmatprep.subr.bf16.mxu1 %v1445_v4 }
  0xa1   :  { %1261 = vmatpush1.bf16.msra.mxu0 %v1702_v16  ;;  %1285 = vmatpush3.bf16.msra.mxu1 %v1706_v17 }
  0xa2   :  { %1287 = vmatprep.subr.bf16.mxu0 %v1497_v8  ;;  %1318 = vmatprep.subr.bf16.mxu1 %v1445_v4 }
 0x157   :  { %v155_v28 = vpop.f32.mrb[0].mxu0  ;;  %v226_v29 = vpop.f32.mrb[0].mxu1 }
 0x158   :  { %v233_v30 = vadd.f32 %v230_v27, %v155_v28  ;;  %v157_v31 = vpop.f32.mrb[1].mxu0  ;;  %v1068_v36 = vpop.f32.mrb[1].mxu1  ;;  %v247_v48 = vadd.f32 %v1770_v46, %v226_v29 }
 0x159   :  { %v240_v38 = vadd.f32 %v231_v35, %v157_v31  ;;  %v948_v35 = vld [vmem:[%s1900_s0 + $0x28] sm:$0xff] }
 0x15a   :  { %v943_v37 = vmul.f32 -1.442695, %v233_v30 }
 0x15b   :  { %v944_v39 = vmul.f32 -1.442695, %v240_v38 }
 0x15c   :  { %1404 = vpow2.f32 %v943_v37 }
 0x15d   :  { %1406 = vpow2.f32 %v944_v39 }
 0x166   :  { %v1405_v40 = vpop.eup %1404 }
 0x167   :  { %v237_v44 = vadd.f32 1.0, %v1405_v40  ;;  %v1407_v45 = vpop.eup %1406 }
 0x168   :  { %v244_v47 = vadd.f32 1.0, %v1407_v45 }
 0x169   :  { %1408 = vrcp.f32 %v237_v44 }
 0x16a   :  { %1410 = vrcp.f32 %v244_v47 }
 0x173   :  { %v1409_v49 = vpop.eup %1408 }
 0x174   :  { %v248_v54 = vmul.f32 %v1409_v49, %v247_v48  ;;  %v1411_v56 = vpop.eup %1410  ;;  %v490_v48 = vpop.permute.xlu1 %489 }
 0x175   :  { %v251_v57 = vsub.f32 1.0, %v1411_v56  ;;  %v253_v63 = vmul.f32 %v1411_v56, %v1716_v21 }
 0x176   :  { %v249_v55 = vadd.f32 %v248_v54, %v232_v53 }
 0x178   :  { %1412 = vtanh.f32 %v249_v55  ;;  %v717_v53 = vpop.permute.xlu1 %716  ;;  %v960_v55 = vld [vmem:[%s1900_s0 + $0x48] sm:$0xff] }
 0x182   :  { %v1413_v58 = vpop.eup %1412 }
 0x183   :  { %v252_v62 = vmul.f32 %v1413_v58, %v251_v57 }
 0x185   :  { %v254_v0 = vadd.f32 %v253_v63, %v252_v62  ;;  %v961_v63 = vld [vmem:[%s1900_s0 + $0x50] sm:$0xff] }
 0x187   :  { %v1777_v2 = vmul.f32 %v263_v1, %v254_v0  ;;  %256 = vst [vmem:[%s1902_s5] sm:$0xff] %v254_v0 }
 0x189   :  { %379 = vmatmul.mubr.f32.vlgmr.msra.gmra.mrb[2].mxu0 %v1777_v2  ;;  %1102 = vmatmul.mubr.f32.vlgmr.msra.gmra.mrb[2].mxu1 %v1777_v2 }
 0x18a   :  { %1289 = vmatpush1.bf16.msra.mxu0 %v1499_v9  ;;  %1320 = vmatpush3.bf16.msra.mxu1 %v1513_v14 }
 0x18b   :  { %1291 = vmatprep.subr.bf16.mxu0 %v1525_v18  ;;  %1321 = vmatprep.subr.bf16.mxu1 %v1445_v4 }
 0x18c   :  { %605 = vmatprep.mubr.f32.mxu0 %v1446_v13  ;;  %1136 = vmatprep.mubr.msk.f32.mxu1 %vm1447_vm0, %v1446_v13 }
 0x18e   :  { %1293 = vmatpush1.bf16.msra.mxu0 %v1537_v22  ;;  %1323 = vmatpush3.bf16.msra.mxu1 %v1544_v24 }
 0x18f   :  { %1295 = vmatprep.subr.bf16.mxu0 %v1546_v25  ;;  %1324 = vmatprep.subr.bf16.mxu1 %v1445_v4 }
 0x192   :  { %1297 = vmatpush1.bf16.msra.mxu0 %v1568_v32  ;;  %1326 = vmatpush3.bf16.msra.mxu1 %v1572_v33 }
 0x193   :  { %1299 = vmatprep.subr.bf16.mxu0 %v1574_v34  ;;  %1327 = vmatprep.subr.bf16.mxu1 %v1445_v4 }
 0x196   :  { %1301 = vmatpush1.bf16.msra.mxu0 %v1596_v41  ;;  %1329 = vmatpush3.bf16.msra.mxu1 %v1600_v42 }
 0x197   :  { %1303 = vmatprep.subr.bf16.mxu0 %v1602_v43  ;;  %1330 = vmatprep.subr.bf16.mxu1 %v1445_v4 }
 0x19a   :  { %1305 = vmatpush1.bf16.msra.mxu0 %v1624_v50  ;;  %1332 = vmatpush3.bf16.msra.mxu1 %v1628_v51 }
 0x19b   :  { %1307 = vmatprep.subr.bf16.mxu0 %v1630_v52  ;;  %1333 = vmatprep.subr.bf16.mxu1 %v1445_v4 }
 0x19e   :  { %1309 = vmatpush1.bf16.msra.mxu0 %v1652_v59  ;;  %1335 = vmatpush3.bf16.msra.mxu1 %v1656_v60 }
 0x19f   :  { %1311 = vmatprep.subr.bf16.mxu0 %v1658_v61  ;;  %1336 = vmatprep.subr.bf16.mxu1 %v1445_v4 }
 0x1a2   :  { %1313 = vmatpush1.bf16.msra.mxu0 %v1680_v5  ;;  %1338 = vmatpush3.bf16.msra.mxu1 %v1684_v6 }
 0x1a3   :  { %1315 = vmatprep.subr.bf16.mxu0 %v1686_v7  ;;  %1339 = vmatprep.subr.bf16.mxu1 %v1445_v4 }
 0x1a6   :  { %1317 = vmatpush1.bf16.msra.mxu0 %v1702_v16  ;;  %1341 = vmatpush3.bf16.msra.mxu1 %v1706_v17 }
 0x1a7   :  { %1343 = vmatprep.subr.bf16.mxu0 %v1497_v8  ;;  %1374 = vmatprep.subr.bf16.mxu1 %v1445_v4 }
 0x25c   :  { %v380_v10 = vpop.f32.mrb[2].mxu0  ;;  %v451_v11 = vpop.f32.mrb[2].mxu1 }
 0x25d   :  { %v459_v12 = vadd.f32 %v946_v3, %v380_v10  ;;  %v382_v15 = vpop.f32.mrb[3].mxu0  ;;  %v1103_v20 = vpop.f32.mrb[3].mxu1  ;;  %v473_v30 = vadd.f32 %v1770_v46, %v451_v11 }
 0x25e   :  { %v466_v23 = vadd.f32 %v947_v19, %v382_v15 }
 0x25f   :  { %v949_v21 = vmul.f32 -1.442695, %v459_v12 }
 0x260   :  { %v950_v26 = vmul.f32 -1.442695, %v466_v23 }
 0x261   :  { %1414 = vpow2.f32 %v949_v21  ;;  %v962_v21 = vld [vmem:[%s1900_s0 + $0x58] sm:$0xff] }
 0x262   :  { %1416 = vpow2.f32 %v950_v26 }
 0x26b   :  { %v1415_v8 = vpop.eup %1414 }
 0x26c   :  { %v463_v27 = vadd.f32 1.0, %v1415_v8  ;;  %v1417_v28 = vpop.eup %1416 }
 0x26d   :  { %v470_v29 = vadd.f32 1.0, %v1417_v28 }
 0x26e   :  { %1418 = vrcp.f32 %v463_v27 }
 0x26f   :  { %1420 = vrcp.f32 %v470_v29 }
 0x278   :  { %v1419_v31 = vpop.eup %1418 }
 0x279   :  { %v474_v36 = vmul.f32 %v1419_v31, %v473_v30  ;;  %v1421_v38 = vpop.eup %1420 }
 0x27a   :  { %v477_v39 = vsub.f32 1.0, %v1421_v38  ;;  %v479_v45 = vmul.f32 %v1421_v38, %v1777_v2 }
 0x27b   :  { %v475_v37 = vadd.f32 %v948_v35, %v474_v36 }
 0x27d   :  { %1422 = vtanh.f32 %v475_v37 }
 0x287   :  { %v1423_v40 = vpop.eup %1422 }
 0x288   :  { %v478_v44 = vmul.f32 %v1423_v40, %v477_v39 }
 0x28a   :  { %v480_v47 = vadd.f32 %v479_v45, %v478_v44 }
 0x28c   :  { %951 = vst [vmem:[%s1902_s5 + $0x8] sm:$0xff] %v480_v47  ;;  %v1833_v49 = vmul.f32 %v490_v48, %v480_v47 }
 0x28e   :  { %606 = vmatmul.mubr.f32.vlgmr.msra.gmra.mrb[4].mxu0 %v1833_v49  ;;  %1137 = vmatmul.mubr.f32.vlgmr.msra.gmra.mrb[4].mxu1 %v1833_v49 }
 0x28f   :  { %1345 = vmatpush1.bf16.msra.mxu0 %v1499_v9  ;;  %1376 = vmatpush3.bf16.msra.mxu1 %v1513_v14  ;;  %v953_v9 = vld [vmem:[%s1900_s0 + $0x30] sm:$0xff] }
 0x290   :  { %1347 = vmatprep.subr.bf16.mxu0 %v1525_v18  ;;  %1377 = vmatprep.subr.bf16.mxu1 %v1445_v4 }
 0x291   :  { %832 = vmatprep.mubr.f32.mxu0 %v1446_v13  ;;  %1171 = vmatprep.mubr.msk.f32.mxu1 %vm1447_vm0, %v1446_v13 }
 0x293   :  { %1349 = vmatpush1.bf16.msra.mxu0 %v1537_v22  ;;  %1379 = vmatpush3.bf16.msra.mxu1 %v1544_v24  ;;  %v954_v24 = vld [vmem:[%s1900_s0 + $0x38] sm:$0xff] }
 0x294   :  { %1351 = vmatprep.subr.bf16.mxu0 %v1546_v25  ;;  %1380 = vmatprep.subr.bf16.mxu1 %v1445_v4 }
 0x297   :  { %1353 = vmatpush1.bf16.msra.mxu0 %v1568_v32  ;;  %1382 = vmatpush3.bf16.msra.mxu1 %v1572_v33 }
 0x298   :  { %1355 = vmatprep.subr.bf16.mxu0 %v1574_v34  ;;  %1383 = vmatprep.subr.bf16.mxu1 %v1445_v4 }
 0x29b   :  { %1357 = vmatpush1.bf16.msra.mxu0 %v1596_v41  ;;  %1385 = vmatpush3.bf16.msra.mxu1 %v1600_v42 }
 0x29c   :  { %1359 = vmatprep.subr.bf16.mxu0 %v1602_v43  ;;  %1386 = vmatprep.subr.bf16.mxu1 %v1445_v4 }
 0x29f   :  { %1361 = vmatpush1.bf16.msra.mxu0 %v1624_v50  ;;  %1388 = vmatpush3.bf16.msra.mxu1 %v1628_v51 }
 0x2a0   :  { %1363 = vmatprep.subr.bf16.mxu0 %v1630_v52  ;;  %1389 = vmatprep.subr.bf16.mxu1 %v1445_v4  ;;  %v955_v52 = vld [vmem:[%s1900_s0 + $0x40] sm:$0xff] }
 0x2a3   :  { %1365 = vmatpush1.bf16.msra.mxu0 %v1652_v59  ;;  %1391 = vmatpush3.bf16.msra.mxu1 %v1656_v60 }
 0x2a4   :  { %1367 = vmatprep.subr.bf16.mxu0 %v1658_v61  ;;  %1392 = vmatprep.subr.bf16.mxu1 %v1445_v4 }
 0x2a7   :  { %1369 = vmatpush1.bf16.msra.mxu0 %v1680_v5  ;;  %1394 = vmatpush3.bf16.msra.mxu1 %v1684_v6 }
 0x2a8   :  { %1371 = vmatprep.subr.bf16.mxu0 %v1686_v7  ;;  %1395 = vmatprep.subr.bf16.mxu1 %v1445_v4 }
 0x2ab   :  { %1373 = vmatpush1.bf16.msra.mxu0 %v1702_v16  ;;  %1397 = vmatpush3.bf16.msra.mxu1 %v1706_v17 }
 0x361   :  { %v607_v13 = vpop.f32.mrb[4].mxu0  ;;  %v678_v14 = vpop.f32.mrb[4].mxu1 }
 0x362   :  { %v686_v18 = vadd.f32 %v953_v9, %v607_v13  ;;  %v609_v22 = vpop.f32.mrb[5].mxu0  ;;  %v1138_v25 = vpop.f32.mrb[5].mxu1  ;;  %v700_v50 = vadd.f32 %v1770_v46, %v678_v14 }
 0x363   :  { %v693_v33 = vadd.f32 %v954_v24, %v609_v22 }
 0x364   :  { %v956_v32 = vmul.f32 -1.442695, %v686_v18 }
 0x365   :  { %v957_v4 = vmul.f32 -1.442695, %v693_v33 }
 0x366   :  { %1424 = vpow2.f32 %v956_v32 }
 0x367   :  { %1426 = vpow2.f32 %v957_v4 }
 0x370   :  { %v1425_v34 = vpop.eup %1424 }
 0x371   :  { %v690_v41 = vadd.f32 1.0, %v1425_v34  ;;  %v1427_v42 = vpop.eup %1426 }
 0x372   :  { %v697_v43 = vadd.f32 1.0, %v1427_v42 }
 0x373   :  { %1428 = vrcp.f32 %v690_v41 }
 0x374   :  { %1430 = vrcp.f32 %v697_v43 }
 0x37d   :  { %v1429_v51 = vpop.eup %1428 }
 0x37e   :  { %v701_v59 = vmul.f32 %v1429_v51, %v700_v50  ;;  %v1431_v61 = vpop.eup %1430 }
 0x37f   :  { %v704_v5 = vsub.f32 1.0, %v1431_v61  ;;  %v706_v16 = vmul.f32 %v1431_v61, %v1833_v49 }
 0x380   :  { %v702_v60 = vadd.f32 %v955_v52, %v701_v59 }
 0x382   :  { %1432 = vtanh.f32 %v702_v60 }
 0x38c   :  { %v1433_v6 = vpop.eup %1432 }
 0x38d   :  { %v705_v7 = vmul.f32 %v1433_v6, %v704_v5 }
 0x38f   :  { %v707_v17 = vadd.f32 %v706_v16, %v705_v7 }
 0x391   :  { %958 = vst [vmem:[%s1902_s5 + $0x10] sm:$0xff] %v707_v17  ;;  %v719_v54 = vmul.f32 %v717_v53, %v707_v17 }
 0x393   :  { %833 = vmatmul.mubr.f32.vlgmr.msra.gmra.mrb[6].mxu0 %v719_v54  ;;  %1172 = vmatmul.mubr.f32.vlgmr.msra.gmra.mrb[6].mxu1 %v719_v54 }
 0x466   :  { %v834_v56 = vpop.f32.mrb[6].mxu0  ;;  %v905_v57 = vpop.f32.mrb[6].mxu1 }
 0x467   :  { %v913_v58 = vadd.f32 %v960_v55, %v834_v56  ;;  %v836_v62 = vpop.f32.mrb[7].mxu0  ;;  %v1173_v0 = vpop.f32.mrb[7].mxu1  ;;  %v927_v19 = vadd.f32 %v1770_v46, %v905_v57 }
 0x468   :  { %v920_v2 = vadd.f32 %v961_v63, %v836_v62 }
 0x469   :  { %v963_v1 = vmul.f32 -1.442695, %v913_v58 }
 0x46a   :  { %v964_v3 = vmul.f32 -1.442695, %v920_v2 }
 0x46b   :  { %1434 = vpow2.f32 %v963_v1 }
 0x46c   :  { %1436 = vpow2.f32 %v964_v3 }
 0x475   :  { %v1435_v10 = vpop.eup %1434 }
 0x476   :  { %v917_v11 = vadd.f32 1.0, %v1435_v10  ;;  %v1437_v12 = vpop.eup %1436 }
 0x477   :  { %v924_v15 = vadd.f32 1.0, %v1437_v12 }
 0x478   :  { %1438 = vrcp.f32 %v917_v11 }
 0x479   :  { %1440 = vrcp.f32 %v924_v15 }
 0x482   :  { %v1439_v20 = vpop.eup %1438 }
 0x483   :  { %v928_v23 = vmul.f32 %v1439_v20, %v927_v19  ;;  %v1441_v8 = vpop.eup %1440 }
 0x484   :  { %v931_v27 = vsub.f32 1.0, %v1441_v8  ;;  %v933_v30 = vmul.f32 %v1441_v8, %v719_v54 }
 0x485   :  { %v929_v26 = vadd.f32 %v962_v21, %v928_v23 }
 0x487   :  { %1442 = vtanh.f32 %v929_v26 }
 0x491   :  { %v1443_v28 = vpop.eup %1442 }
 0x492   :  { %v932_v29 = vmul.f32 %v1443_v28, %v931_v27 }
 0x494   :  { %v934_v31 = vadd.f32 %v933_v30, %v932_v29 }
 0x496   :  { %965 = vst [vmem:[%s1902_s5 + $0x18] sm:$0xff] %v934_v31 }

</bundles_post_ra>
